<compile_context>
chip_gen: v6e
topology: v6e:2x2x1
jax: 0.10.0
libtpu: 0.0.40
codegen_flags: <defaults>
</compile_context>

<pallas_src>
import functools

import jax
import jax.numpy as jnp
from jax import lax
from jax.experimental import pallas as pl
from jax.experimental.pallas import tpu as pltpu


# ---------------------------------------------------------------------------
# Pallas kernels: tiled GEMM + bias (+ residual) + optional ReLU
# ---------------------------------------------------------------------------
def _gemm_bn_kernel(a_ref, b_ref, bias_ref, o_ref, acc_ref, *, relu):
    @pl.when(pl.program_id(2) == 0)
    def _init():
        acc_ref[...] = jnp.zeros_like(acc_ref)

    acc_ref[...] += jnp.dot(a_ref[...], b_ref[...],
                            preferred_element_type=jnp.float32)

    @pl.when(pl.program_id(2) == pl.num_programs(2) - 1)
    def _finalize():
        out = acc_ref[...] + bias_ref[...]
        if relu:
            out = jnp.maximum(out, 0.0)
        o_ref[...] = out.astype(o_ref.dtype)


def _gemm_bn_res_kernel(a_ref, b_ref, bias_ref, res_ref, o_ref, acc_ref, *, relu):
    @pl.when(pl.program_id(2) == 0)
    def _init():
        acc_ref[...] = jnp.zeros_like(acc_ref)

    acc_ref[...] += jnp.dot(a_ref[...], b_ref[...],
                            preferred_element_type=jnp.float32)

    @pl.when(pl.program_id(2) == pl.num_programs(2) - 1)
    def _finalize():
        out = acc_ref[...] + bias_ref[...] + res_ref[...].astype(jnp.float32)
        if relu:
            out = jnp.maximum(out, 0.0)
        o_ref[...] = out.astype(o_ref.dtype)


def _round_up(x, m):
    return (x + m - 1) // m * m


def fused_conv_gemm(a, b, bias, res=None, *, relu, out_dtype=jnp.bfloat16):
    """out = relu?(a @ b + bias [+ res]).

    a: (M, K) bf16   b: (K, N) bf16 (BN scale already folded in)
    bias: (N,) f32   res: optional (M, N) array. Returns (M, N) out_dtype.
    """
    m, k = a.shape
    k2, n = b.shape
    assert k == k2

    # Tile sizes: lane-dense N (128), big-ish M tiles, K tile matched to MXU depth.
    tm = 256 if m >= 256 else 128
    tn = 128
    tk = 256 if k >= 256 else 128

    mp, np_, kp = _round_up(m, tm), _round_up(n, tn), _round_up(k, tk)
    a = jnp.pad(a, ((0, mp - m), (0, kp - k)))
    b = jnp.pad(b, ((0, kp - k), (0, np_ - n)))
    bias = jnp.pad(bias.astype(jnp.float32), (0, np_ - n)).reshape(1, np_)

    grid = (mp // tm, np_ // tn, kp // tk)

    in_specs = [
        pl.BlockSpec((tm, tk), lambda i, j, kk: (i, kk)),
        pl.BlockSpec((tk, tn), lambda i, j, kk: (kk, j)),
        pl.BlockSpec((1, tn), lambda i, j, kk: (0, j)),
    ]
    args = [a, b, bias]
    if res is None:
        kern = functools.partial(_gemm_bn_kernel, relu=relu)
    else:
        res = jnp.pad(res, ((0, mp - m), (0, np_ - n)))
        in_specs.append(pl.BlockSpec((tm, tn), lambda i, j, kk: (i, j)))
        args.append(res)
        kern = functools.partial(_gemm_bn_res_kernel, relu=relu)

    out = pl.pallas_call(
        kern,
        out_shape=jax.ShapeDtypeStruct((mp, np_), out_dtype),
        grid=grid,
        in_specs=in_specs,
        out_specs=pl.BlockSpec((tm, tn), lambda i, j, kk: (i, j)),
        scratch_shapes=[pltpu.VMEM((tm, tn), jnp.float32)],
        compiler_params=pltpu.CompilerParams(
            dimension_semantics=("parallel", "parallel", "arbitrary"),
            vmem_limit_bytes=48 * 1024 * 1024,
        ),
    )(*args)
    return out[:m, :n]


# ---------------------------------------------------------------------------
# Conv2d (no bias) + folded eval-mode BatchNorm + optional residual + ReLU
# (im2col glue in plain JAX; the GEMM hot path is the Pallas kernel above)
# ---------------------------------------------------------------------------
def conv_bn(x_nhwc, w_oihw, gamma, beta, mean, var, *, stride, padding,
            residual=None, relu, out_dtype=jnp.bfloat16, eps=1e-5):
    n, h, w, cin = x_nhwc.shape
    cout, cin_w, kh, kw = w_oihw.shape
    assert cin == cin_w
    ho = (h + 2 * padding - kh) // stride + 1
    wo = (w + 2 * padding - kw) // stride + 1

    # Fold BN (eval mode) into per-output-channel scale folded into the weights,
    # plus a bias applied in the kernel epilogue.
    scale = gamma / jnp.sqrt(var + eps)                 # (cout,)
    bias = beta - mean * scale                          # (cout,)
    # (Cout,Cin,KH,KW) -> (KH,KW,Cin,Cout) -> (KH*KW*Cin, Cout), scaled, bf16.
    wmat = jnp.transpose(w_oihw, (2, 3, 1, 0)).reshape(kh * kw * cin, cout)
    wmat = (wmat * scale[None, :]).astype(jnp.bfloat16)

    xb = x_nhwc.astype(jnp.bfloat16)
    if padding:
        xb = jnp.pad(xb, ((0, 0), (padding, padding), (padding, padding), (0, 0)))
    cols = []
    for ikh in range(kh):          # stride / bounds are static Python ints
        for ikw in range(kw):
            cols.append(xb[:, ikh:ikh + (ho - 1) * stride + 1:stride,
                             ikw:ikw + (wo - 1) * stride + 1:stride, :])
    patches = jnp.concatenate(cols, axis=-1) if len(cols) > 1 else cols[0]
    a = patches.reshape(n * ho * wo, kh * kw * cin)

    res = None
    if residual is not None:
        res = residual.reshape(n * ho * wo, cout)

    out = fused_conv_gemm(a, wmat, bias, res, relu=relu, out_dtype=out_dtype)
    return out.reshape(n, ho, wo, cout)


# ---------------------------------------------------------------------------
# BasicBlockEnc forward (NCHW in / NCHW out, matching the PyTorch module)
# ---------------------------------------------------------------------------
def basic_block_enc_forward(x_nchw, p, *, stride):
    x = jnp.transpose(x_nchw, (0, 2, 3, 1)).astype(jnp.float32)  # NCHW -> NHWC

    out1 = conv_bn(x, p["conv1_w"], p["bn1_g"], p["bn1_b"], p["bn1_m"], p["bn1_v"],
                   stride=stride, padding=1, relu=True, out_dtype=jnp.bfloat16)

    if stride == 1:
        shortcut = x                                    # identity (kept f32)
    else:
        shortcut = conv_bn(x, p["sc_w"], p["sc_g"], p["sc_b"], p["sc_m"], p["sc_v"],
                           stride=stride, padding=0, relu=False,
                           out_dtype=jnp.bfloat16)

    # conv2 + bn2 + residual + relu, fused in one kernel; final output in f32.
    out2 = conv_bn(out1, p["conv2_w"], p["bn2_g"], p["bn2_b"], p["bn2_m"], p["bn2_v"],
                   stride=1, padding=1, residual=shortcut, relu=True,
                   out_dtype=jnp.float32)

    return jnp.transpose(out2, (0, 3, 1, 2))            # NHWC -> NCHW


# ---------------------------------------------------------------------------
# Plain-JAX reference (f32) for correctness checking
# ---------------------------------------------------------------------------
def _ref_conv_bn(x, w, g, b, m, v, *, stride, padding, eps=1e-5):
    y = lax.conv_general_dilated(
        x, w, window_strides=(stride, stride),
        padding=[(padding, padding), (padding, padding)],
        dimension_numbers=("NCHW", "OIHW", "NCHW"))
    scale = (g / jnp.sqrt(v + eps)).reshape(1, -1, 1, 1)
    bias = (b - m * g / jnp.sqrt(v + eps)).reshape(1, -1, 1, 1)
    return y * scale + bias


def ref_block(x, p, stride):
    out = jax.nn.relu(_ref_conv_bn(x, p["conv1_w"], p["bn1_g"], p["bn1_b"],
                                   p["bn1_m"], p["bn1_v"], stride=stride, padding=1))
    out = _ref_conv_bn(out, p["conv2_w"], p["bn2_g"], p["bn2_b"],
                       p["bn2_m"], p["bn2_v"], stride=1, padding=1)
    if stride == 1:
        sc = x
    else:
        sc = _ref_conv_bn(x, p["sc_w"], p["sc_g"], p["sc_b"],
                          p["sc_m"], p["sc_v"], stride=stride, padding=0)
    return jax.nn.relu(out + sc)


# ---------------------------------------------------------------------------
# Deterministic parameter construction (matches nn.Module shapes)
# ---------------------------------------------------------------------------
def make_params(key, in_planes, stride):
    planes = in_planes * stride
    keys = jax.random.split(key, 6)

    def conv_w(k, cout, cin, ksz):
        fan_in = cin * ksz * ksz
        return jax.random.normal(k, (cout, cin, ksz, ksz), jnp.float32) / jnp.sqrt(fan_in)

    def bn(k, c):
        k1, k2, k3, k4 = jax.random.split(k, 4)
        g = 1.0 + 0.1 * jax.random.normal(k1, (c,), jnp.float32)
        b = 0.1 * jax.random.normal(k2, (c,), jnp.float32)
        m = 0.1 * jax.random.normal(k3, (c,), jnp.float32)
        v = 1.0 + 0.1 * jax.random.uniform(k4, (c,), jnp.float32)
        return g, b, m, v

    p = {}
    p["conv1_w"] = conv_w(keys[0], planes, in_planes, 3)
    p["bn1_g"], p["bn1_b"], p["bn1_m"], p["bn1_v"] = bn(keys[1], planes)
    p["conv2_w"] = conv_w(keys[2], planes, planes, 3)
    p["bn2_g"], p["bn2_b"], p["bn2_m"], p["bn2_v"] = bn(keys[3], planes)
    if stride != 1:
        p["sc_w"] = conv_w(keys[4], planes, in_planes, 1)
        p["sc_g"], p["sc_b"], p["sc_m"], p["sc_v"] = bn(keys[5], planes)
    return p


# ---------------------------------------------------------------------------
if __name__ == "__main__":
    key = jax.random.PRNGKey(0)
    k_x, k_p2, k_p1 = jax.random.split(key, 3)

    # Input: batch=2, in_planes=64, 16x16 spatial (NCHW, like the PyTorch module).
    x = jax.random.normal(k_x, (2, 64, 16, 16), jnp.float32)

    # --- stride=2 block (downsampling path with 1x1 conv shortcut) -----------
    p2 = make_params(k_p2, in_planes=64, stride=2)
    fwd2 = jax.jit(functools.partial(basic_block_enc_forward, stride=2))
    y2 = fwd2(x, p2)
    jax.block_until_ready(y2)
    assert y2.shape == (2, 128, 8, 8), y2.shape
    ref2 = ref_block(x, p2, 2)
    err2 = float(jnp.max(jnp.abs(y2 - ref2)))
    assert err2 < 0.2, f"stride=2 max abs err {err2}"

    # --- stride=1 block (identity shortcut) ----------------------------------
    p1 = make_params(k_p1, in_planes=64, stride=1)
    fwd1 = jax.jit(functools.partial(basic_block_enc_forward, stride=1))
    y1 = fwd1(x, p1)
    jax.block_until_ready(y1)
    assert y1.shape == (2, 64, 16, 16), y1.shape
    ref1 = ref_block(x, p1, 1)
    err1 = float(jnp.max(jnp.abs(y1 - ref1)))
    assert err1 < 0.2, f"stride=1 max abs err {err1}"

    assert bool(jnp.all(jnp.isfinite(y1))) and bool(jnp.all(jnp.isfinite(y2)))
    print("KERNEL_OK")
</pallas_src>

<mosaic_0001>
module attributes {stable_mosaic.version = 11 : i64} {
  func.func @_gemm_bn_kernel(%arg0: i32, %arg1: i32, %arg2: i32, %arg3: memref<128x128xbf16, #tpu.memory_space<vmem>>, %arg4: memref<128x128xbf16, #tpu.memory_space<vmem>>, %arg5: memref<1x128xf32, #tpu.memory_space<vmem>>, %arg6: memref<128x128xbf16, #tpu.memory_space<vmem>>, %arg7: memref<128x128xf32, #tpu.memory_space<vmem>>) attributes {dimension_semantics = [#tpu.dimension_semantics<parallel>, #tpu.dimension_semantics<parallel>, #tpu.dimension_semantics<arbitrary>], iteration_bounds = array<i64: 1, 1, 1>, scalar_prefetch = 0 : i64, scratch_operands = 1 : i64, tpu.core_type = #tpu.core_type<tc>, window_params = [{transform_indices = @transform_0, window_bounds = array<i64: 128, 128>}, {transform_indices = @transform_1, window_bounds = array<i64: 128, 128>}, {transform_indices = @transform_2, window_bounds = array<i64: 1, 128>}, {transform_indices = @transform_3, window_bounds = array<i64: 128, 128>}]} {
    %c0_i32 = arith.constant 0 : i32
    %0 = arith.cmpi eq, %arg2, %c0_i32 : i32
    %1 = arith.extui %0 : i1 to i32
    %c0_i32_0 = arith.constant 0 : i32
    %2 = arith.cmpi ne, %1, %c0_i32_0 : i32
    scf.if %2 {
      %cst_10 = arith.constant 0.000000e+00 : f32
      %12 = vector.broadcast %cst_10 : f32 to vector<128x128xf32>
      %c0_11 = arith.constant 0 : index
      %c0_12 = arith.constant 0 : index
      %13 = vector.load %arg7[%c0_11, %c0_12] : memref<128x128xf32, #tpu.memory_space<vmem>>, vector<128x128xf32>
      tpu.vector_store %arg7[%c0_11, %c0_12], %12 {strides = array<i32>} : memref<128x128xf32, #tpu.memory_space<vmem>>, vector<128x128xf32>,
    } else {
    }
    %c0 = arith.constant 0 : index
    %c0_1 = arith.constant 0 : index
    %3 = vector.load %arg7[%c0, %c0_1] : memref<128x128xf32, #tpu.memory_space<vmem>>, vector<128x128xf32>
    %c0_2 = arith.constant 0 : index
    %c0_3 = arith.constant 0 : index
    %4 = vector.load %arg3[%c0_2, %c0_3] : memref<128x128xbf16, #tpu.memory_space<vmem>>, vector<128x128xbf16>
    %c0_4 = arith.constant 0 : index
    %c0_5 = arith.constant 0 : index
    %5 = vector.load %arg4[%c0_4, %c0_5] : memref<128x128xbf16, #tpu.memory_space<vmem>>, vector<128x128xbf16>
    %cst = arith.constant dense<0.000000e+00> : vector<128x128xf32>
    %6 = tpu.matmul %4, %5, %cst {dimension_numbers = #tpu.dot_dimension_numbers<[1], [0], [0], [1], [0, 0, 1, 1], [], []>} : vector<128x128xbf16>, vector<128x128xbf16>, vector<128x128xf32> -> vector<128x128xf32>
    %7 = arith.addf %3, %6 : vector<128x128xf32>
    %c0_6 = arith.constant 0 : index
    %c0_7 = arith.constant 0 : index
    %8 = vector.load %arg7[%c0_6, %c0_7] : memref<128x128xf32, #tpu.memory_space<vmem>>, vector<128x128xf32>
    tpu.vector_store %arg7[%c0_6, %c0_7], %7 {strides = array<i32>} : memref<128x128xf32, #tpu.memory_space<vmem>>, vector<128x128xf32>,
    %c0_i32_8 = arith.constant 0 : i32
    %9 = arith.cmpi eq, %arg2, %c0_i32_8 : i32
    %10 = arith.extui %9 : i1 to i32
    %c0_i32_9 = arith.constant 0 : i32
    %11 = arith.cmpi ne, %10, %c0_i32_9 : i32
    scf.if %11 {
      %c0_10 = arith.constant 0 : index
      %c0_11 = arith.constant 0 : index
      %12 = vector.load %arg7[%c0_10, %c0_11] : memref<128x128xf32, #tpu.memory_space<vmem>>, vector<128x128xf32>
      %c0_12 = arith.constant 0 : index
      %c0_13 = arith.constant 0 : index
      %13 = vector.load %arg5[%c0_12, %c0_13] : memref<1x128xf32, #tpu.memory_space<vmem>>, vector<1x128xf32>
      %14 = vector.broadcast %13 : vector<1x128xf32> to vector<128x128xf32>
      %15 = arith.addf %12, %14 : vector<128x128xf32>
      %16 = arith.truncf %15 : vector<128x128xf32> to vector<128x128xbf16>
      %c0_14 = arith.constant 0 : index
      %c0_15 = arith.constant 0 : index
      %17 = vector.load %arg6[%c0_14, %c0_15] : memref<128x128xbf16, #tpu.memory_space<vmem>>, vector<128x128xbf16>
      tpu.vector_store %arg6[%c0_14, %c0_15], %16 {strides = array<i32>} : memref<128x128xbf16, #tpu.memory_space<vmem>>, vector<128x128xbf16>,
    } else {
    }
    return
  }
  func.func @transform_0(%arg0: i32, %arg1: i32, %arg2: i32) -> (i32, i32) {
    %c0_i32 = arith.constant 0 : i32
    return %arg0, %arg2 : i32, i32
  }
  func.func @transform_1(%arg0: i32, %arg1: i32, %arg2: i32) -> (i32, i32) {
    %c0_i32 = arith.constant 0 : i32
    return %arg2, %arg1 : i32, i32
  }
  func.func @transform_2(%arg0: i32, %arg1: i32, %arg2: i32) -> (i32, i32) {
    %c0_i32 = arith.constant 0 : i32
    %c0_i32_0 = arith.constant 0 : i32
    return %c0_i32, %arg1 : i32, i32
  }
  func.func @transform_3(%arg0: i32, %arg1: i32, %arg2: i32) -> (i32, i32) {
    %c0_i32 = arith.constant 0 : i32
    return %arg0, %arg1 : i32, i32
  }
}

module attributes {stable_mosaic.version = 11 : i64} {
  func.func @_gemm_bn_kernel(%arg0: i32, %arg1: i32, %arg2: i32, %arg3: memref<128x256xbf16, #tpu.memory_space<vmem>>, %arg4: memref<256x128xbf16, #tpu.memory_space<vmem>>, %arg5: memref<1x128xf32, #tpu.memory_space<vmem>>, %arg6: memref<128x128xbf16, #tpu.memory_space<vmem>>, %arg7: memref<128x128xf32, #tpu.memory_space<vmem>>) attributes {dimension_semantics = [#tpu.dimension_semantics<parallel>, #tpu.dimension_semantics<parallel>, #tpu.dimension_semantics<arbitrary>], iteration_bounds = array<i64: 1, 1, 3>, scalar_prefetch = 0 : i64, scratch_operands = 1 : i64, tpu.core_type = #tpu.core_type<tc>, window_params = [{transform_indices = @transform_0, window_bounds = array<i64: 128, 256>}, {transform_indices = @transform_1, window_bounds = array<i64: 256, 128>}, {transform_indices = @transform_2, window_bounds = array<i64: 1, 128>}, {transform_indices = @transform_3, window_bounds = array<i64: 128, 128>}]} {
    %c0_i32 = arith.constant 0 : i32
    %0 = arith.cmpi eq, %arg2, %c0_i32 : i32
    %1 = arith.extui %0 : i1 to i32
    %c0_i32_0 = arith.constant 0 : i32
    %2 = arith.cmpi ne, %1, %c0_i32_0 : i32
    scf.if %2 {
      %cst_9 = arith.constant 0.000000e+00 : f32
      %12 = vector.broadcast %cst_9 : f32 to vector<128x128xf32>
      %c0_10 = arith.constant 0 : index
      %c0_11 = arith.constant 0 : index
      %13 = vector.load %arg7[%c0_10, %c0_11] : memref<128x128xf32, #tpu.memory_space<vmem>>, vector<128x128xf32>
      tpu.vector_store %arg7[%c0_10, %c0_11], %12 {strides = array<i32>} : memref<128x128xf32, #tpu.memory_space<vmem>>, vector<128x128xf32>,
    } else {
    }
    %c0 = arith.constant 0 : index
    %c0_1 = arith.constant 0 : index
    %3 = vector.load %arg7[%c0, %c0_1] : memref<128x128xf32, #tpu.memory_space<vmem>>, vector<128x128xf32>
    %c0_2 = arith.constant 0 : index
    %c0_3 = arith.constant 0 : index
    %4 = vector.load %arg3[%c0_2, %c0_3] : memref<128x256xbf16, #tpu.memory_space<vmem>>, vector<128x256xbf16>
    %c0_4 = arith.constant 0 : index
    %c0_5 = arith.constant 0 : index
    %5 = vector.load %arg4[%c0_4, %c0_5] : memref<256x128xbf16, #tpu.memory_space<vmem>>, vector<256x128xbf16>
    %cst = arith.constant dense<0.000000e+00> : vector<128x128xf32>
    %6 = tpu.matmul %4, %5, %cst {dimension_numbers = #tpu.dot_dimension_numbers<[1], [0], [0], [1], [0, 0, 1, 1], [], []>} : vector<128x256xbf16>, vector<256x128xbf16>, vector<128x128xf32> -> vector<128x128xf32>
    %7 = arith.addf %3, %6 : vector<128x128xf32>
    %c0_6 = arith.constant 0 : index
    %c0_7 = arith.constant 0 : index
    %8 = vector.load %arg7[%c0_6, %c0_7] : memref<128x128xf32, #tpu.memory_space<vmem>>, vector<128x128xf32>
    tpu.vector_store %arg7[%c0_6, %c0_7], %7 {strides = array<i32>} : memref<128x128xf32, #tpu.memory_space<vmem>>, vector<128x128xf32>,
    %c2_i32 = arith.constant 2 : i32
    %9 = arith.cmpi eq, %arg2, %c2_i32 : i32
    %10 = arith.extui %9 : i1 to i32
    %c0_i32_8 = arith.constant 0 : i32
    %11 = arith.cmpi ne, %10, %c0_i32_8 : i32
    scf.if %11 {
      %c0_9 = arith.constant 0 : index
      %c0_10 = arith.constant 0 : index
      %12 = vector.load %arg7[%c0_9, %c0_10] : memref<128x128xf32, #tpu.memory_space<vmem>>, vector<128x128xf32>
      %c0_11 = arith.constant 0 : index
      %c0_12 = arith.constant 0 : index
      %13 = vector.load %arg5[%c0_11, %c0_12] : memref<1x128xf32, #tpu.memory_space<vmem>>, vector<1x128xf32>
      %14 = vector.broadcast %13 : vector<1x128xf32> to vector<128x128xf32>
      %15 = arith.addf %12, %14 : vector<128x128xf32>
      %cst_13 = arith.constant 0.000000e+00 : f32
      %16 = vector.broadcast %cst_13 : f32 to vector<128x128xf32>
      %17 = arith.maximumf %15, %16 : vector<128x128xf32>
      %18 = arith.truncf %17 : vector<128x128xf32> to vector<128x128xbf16>
      %c0_14 = arith.constant 0 : index
      %c0_15 = arith.constant 0 : index
      %19 = vector.load %arg6[%c0_14, %c0_15] : memref<128x128xbf16, #tpu.memory_space<vmem>>, vector<128x128xbf16>
      tpu.vector_store %arg6[%c0_14, %c0_15], %18 {strides = array<i32>} : memref<128x128xbf16, #tpu.memory_space<vmem>>, vector<128x128xbf16>,
    } else {
    }
    return
  }
  func.func @transform_0(%arg0: i32, %arg1: i32, %arg2: i32) -> (i32, i32) {
    %c0_i32 = arith.constant 0 : i32
    return %arg0, %arg2 : i32, i32
  }
  func.func @transform_1(%arg0: i32, %arg1: i32, %arg2: i32) -> (i32, i32) {
    %c0_i32 = arith.constant 0 : i32
    return %arg2, %arg1 : i32, i32
  }
  func.func @transform_2(%arg0: i32, %arg1: i32, %arg2: i32) -> (i32, i32) {
    %c0_i32 = arith.constant 0 : i32
    %c0_i32_0 = arith.constant 0 : i32
    return %c0_i32, %arg1 : i32, i32
  }
  func.func @transform_3(%arg0: i32, %arg1: i32, %arg2: i32) -> (i32, i32) {
    %c0_i32 = arith.constant 0 : i32
    return %arg0, %arg1 : i32, i32
  }
}

module attributes {stable_mosaic.version = 11 : i64} {
  func.func @_gemm_bn_res_kernel(%arg0: i32, %arg1: i32, %arg2: i32, %arg3: memref<128x256xbf16, #tpu.memory_space<vmem>>, %arg4: memref<256x128xbf16, #tpu.memory_space<vmem>>, %arg5: memref<1x128xf32, #tpu.memory_space<vmem>>, %arg6: memref<128x128xbf16, #tpu.memory_space<vmem>>, %arg7: memref<128x128xf32, #tpu.memory_space<vmem>>, %arg8: memref<128x128xf32, #tpu.memory_space<vmem>>) attributes {dimension_semantics = [#tpu.dimension_semantics<parallel>, #tpu.dimension_semantics<parallel>, #tpu.dimension_semantics<arbitrary>], iteration_bounds = array<i64: 1, 1, 5>, scalar_prefetch = 0 : i64, scratch_operands = 1 : i64, tpu.core_type = #tpu.core_type<tc>, window_params = [{transform_indices = @transform_0, window_bounds = array<i64: 128, 256>}, {transform_indices = @transform_1, window_bounds = array<i64: 256, 128>}, {transform_indices = @transform_2, window_bounds = array<i64: 1, 128>}, {transform_indices = @transform_3, window_bounds = array<i64: 128, 128>}, {transform_indices = @transform_4, window_bounds = array<i64: 128, 128>}]} {
    %c0_i32 = arith.constant 0 : i32
    %0 = arith.cmpi eq, %arg2, %c0_i32 : i32
    %1 = arith.extui %0 : i1 to i32
    %c0_i32_0 = arith.constant 0 : i32
    %2 = arith.cmpi ne, %1, %c0_i32_0 : i32
    scf.if %2 {
      %cst_9 = arith.constant 0.000000e+00 : f32
      %12 = vector.broadcast %cst_9 : f32 to vector<128x128xf32>
      %c0_10 = arith.constant 0 : index
      %c0_11 = arith.constant 0 : index
      %13 = vector.load %arg8[%c0_10, %c0_11] : memref<128x128xf32, #tpu.memory_space<vmem>>, vector<128x128xf32>
      tpu.vector_store %arg8[%c0_10, %c0_11], %12 {strides = array<i32>} : memref<128x128xf32, #tpu.memory_space<vmem>>, vector<128x128xf32>,
    } else {
    }
    %c0 = arith.constant 0 : index
    %c0_1 = arith.constant 0 : index
    %3 = vector.load %arg8[%c0, %c0_1] : memref<128x128xf32, #tpu.memory_space<vmem>>, vector<128x128xf32>
    %c0_2 = arith.constant 0 : index
    %c0_3 = arith.constant 0 : index
    %4 = vector.load %arg3[%c0_2, %c0_3] : memref<128x256xbf16, #tpu.memory_space<vmem>>, vector<128x256xbf16>
    %c0_4 = arith.constant 0 : index
    %c0_5 = arith.constant 0 : index
    %5 = vector.load %arg4[%c0_4, %c0_5] : memref<256x128xbf16, #tpu.memory_space<vmem>>, vector<256x128xbf16>
    %cst = arith.constant dense<0.000000e+00> : vector<128x128xf32>
    %6 = tpu.matmul %4, %5, %cst {dimension_numbers = #tpu.dot_dimension_numbers<[1], [0], [0], [1], [0, 0, 1, 1], [], []>} : vector<128x256xbf16>, vector<256x128xbf16>, vector<128x128xf32> -> vector<128x128xf32>
    %7 = arith.addf %3, %6 : vector<128x128xf32>
    %c0_6 = arith.constant 0 : index
    %c0_7 = arith.constant 0 : index
    %8 = vector.load %arg8[%c0_6, %c0_7] : memref<128x128xf32, #tpu.memory_space<vmem>>, vector<128x128xf32>
    tpu.vector_store %arg8[%c0_6, %c0_7], %7 {strides = array<i32>} : memref<128x128xf32, #tpu.memory_space<vmem>>, vector<128x128xf32>,
    %c4_i32 = arith.constant 4 : i32
    %9 = arith.cmpi eq, %arg2, %c4_i32 : i32
    %10 = arith.extui %9 : i1 to i32
    %c0_i32_8 = arith.constant 0 : i32
    %11 = arith.cmpi ne, %10, %c0_i32_8 : i32
    scf.if %11 {
      %c0_9 = arith.constant 0 : index
      %c0_10 = arith.constant 0 : index
      %12 = vector.load %arg8[%c0_9, %c0_10] : memref<128x128xf32, #tpu.memory_space<vmem>>, vector<128x128xf32>
      %c0_11 = arith.constant 0 : index
      %c0_12 = arith.constant 0 : index
      %13 = vector.load %arg5[%c0_11, %c0_12] : memref<1x128xf32, #tpu.memory_space<vmem>>, vector<1x128xf32>
      %14 = vector.broadcast %13 : vector<1x128xf32> to vector<128x128xf32>
      %15 = arith.addf %12, %14 : vector<128x128xf32>
      %c0_13 = arith.constant 0 : index
      %c0_14 = arith.constant 0 : index
      %16 = vector.load %arg6[%c0_13, %c0_14] : memref<128x128xbf16, #tpu.memory_space<vmem>>, vector<128x128xbf16>
      %17 = arith.extf %16 : vector<128x128xbf16> to vector<128x128xf32>
      %18 = arith.addf %15, %17 : vector<128x128xf32>
      %cst_15 = arith.constant 0.000000e+00 : f32
      %19 = vector.broadcast %cst_15 : f32 to vector<128x128xf32>
      %20 = arith.maximumf %18, %19 : vector<128x128xf32>
      %c0_16 = arith.constant 0 : index
      %c0_17 = arith.constant 0 : index
      %21 = vector.load %arg7[%c0_16, %c0_17] : memref<128x128xf32, #tpu.memory_space<vmem>>, vector<128x128xf32>
      tpu.vector_store %arg7[%c0_16, %c0_17], %20 {strides = array<i32>} : memref<128x128xf32, #tpu.memory_space<vmem>>, vector<128x128xf32>,
    } else {
    }
    return
  }
  func.func @transform_0(%arg0: i32, %arg1: i32, %arg2: i32) -> (i32, i32) {
    %c0_i32 = arith.constant 0 : i32
    return %arg0, %arg2 : i32, i32
  }
  func.func @transform_1(%arg0: i32, %arg1: i32, %arg2: i32) -> (i32, i32) {
    %c0_i32 = arith.constant 0 : i32
    return %arg2, %arg1 : i32, i32
  }
  func.func @transform_2(%arg0: i32, %arg1: i32, %arg2: i32) -> (i32, i32) {
    %c0_i32 = arith.constant 0 : i32
    %c0_i32_0 = arith.constant 0 : i32
    return %c0_i32, %arg1 : i32, i32
  }
  func.func @transform_3(%arg0: i32, %arg1: i32, %arg2: i32) -> (i32, i32) {
    %c0_i32 = arith.constant 0 : i32
    return %arg0, %arg1 : i32, i32
  }
  func.func @transform_4(%arg0: i32, %arg1: i32, %arg2: i32) -> (i32, i32) {
    %c0_i32 = arith.constant 0 : i32
    return %arg0, %arg1 : i32, i32
  }
}

</mosaic_0001>

<bundles_post_ra>
// kernel: basic_block_enc_forward.4
= control target key start
LH: loop header
LB: loop body
LE: loop exit
PB: predicated region body
PF: predicated region fallthrough
CT: control target
= control target key end

     0   :  { %s705_s1 = inlined_call_operand.vmem [shape: bf16[128,128], index: 1, kind: input, shape index: {}]   ;;  %s706_s0 = inlined_call_operand.vmem [shape: bf16[128,128], index: 0, kind: input, shape index: {}]   ;;  %s707_s2 = inlined_call_operand.vmem [shape: f32[1,128], index: 2, kind: input, shape index: {}]   ;;  %s708_s3 = inlined_call_operand.vmem [shape: bf16[128,128], index: 3, kind: output, shape index: {}]  }
   0x1   :  { %v594_v0 = vld [vmem:[%s705_s1 + $0x38] sm:$0xff]   ;;  %v595_v1 = vld [vmem:[%s705_s1 + $0x30] sm:$0xff]   ;;  %v596_v2 = vld [vmem:[%s705_s1 + $0x28] sm:$0xff]  }
   0x2   :  { %546 = vmatprep.subr.bf16.mxu0 %v594_v0  ;;  %578 = vmatprep.subr.bf16.mxu1 %v594_v0  ;;  %v597_v3 = vld [vmem:[%s705_s1 + $0x20] sm:$0xff]   ;;  %v598_v6 = vld [vmem:[%s705_s1 + $0x18] sm:$0xff]   ;;  %v599_v7 = vld [vmem:[%s705_s1 + $0x10] sm:$0xff]  }
   0x3   :  { %547 = vmatpush3.bf16.msra.mxu0 %v594_v0  ;;  %586 = vmatpush3.bf16.msra.mxu1 %v594_v0  ;;  %v602_v4 = vld [vmem:[%s706_s0] sm:$0xff]   ;;  %v600_v8 = vld [vmem:[%s705_s1 + $0x8] sm:$0xff]   ;;  %v606_v12 = vld [vmem:[%s706_s0 + $0x10] sm:$0xff]  }
   0x4   :  { %548 = vmatprep.subr.bf16.mxu0 %v595_v1  ;;  %579 = vmatprep.subr.bf16.mxu1 %v595_v1  ;;  %v603_v5 = vld [vmem:[%s706_s0 + $0x20] sm:$0xff]   ;;  %v604_v10 = vld [vmem:[%s706_s0 + $0x8] sm:$0xff]   ;;  %v607_v13 = vld [vmem:[%s706_s0 + $0x30] sm:$0xff]  }
   0x5   :  { %562 = vmatprep.mubr.bf16.mxu0 %v602_v4  ;;  %570 = vmatprep.mubr.bf16.mxu1 %v603_v5  ;;  %v601_v9 = vld [vmem:[%s705_s1] sm:$0xff]   ;;  %v605_v11 = vld [vmem:[%s706_s0 + $0x28] sm:$0xff]   ;;  %v608_v14 = vld [vmem:[%s706_s0 + $0x18] sm:$0xff]  }
   0x6   :  { %v609_v15 = vld [vmem:[%s706_s0 + $0x38] sm:$0xff]   ;;  %v450_v18 = vld [vmem:[%s707_s2] ss:$0 sm:$0xff] }
   0x7   :  { %549 = vmatpush3.bf16.msra.mxu0 %v595_v1  ;;  %587 = vmatpush3.bf16.msra.mxu1 %v595_v1 }
   0x8   :  { %550 = vmatprep.subr.bf16.mxu0 %v596_v2  ;;  %580 = vmatprep.subr.bf16.mxu1 %v596_v2 }
   0xb   :  { %551 = vmatpush3.bf16.msra.mxu0 %v596_v2  ;;  %588 = vmatpush3.bf16.msra.mxu1 %v596_v2 }
   0xc   :  { %552 = vmatprep.subr.bf16.mxu0 %v597_v3  ;;  %581 = vmatprep.subr.bf16.mxu1 %v597_v3 }
   0xf   :  { %553 = vmatpush3.bf16.msra.mxu0 %v597_v3  ;;  %589 = vmatpush3.bf16.msra.mxu1 %v597_v3 }
  0x10   :  { %554 = vmatprep.subr.bf16.mxu0 %v598_v6  ;;  %582 = vmatprep.subr.bf16.mxu1 %v598_v6 }
  0x13   :  { %555 = vmatpush3.bf16.msra.mxu0 %v598_v6  ;;  %590 = vmatpush3.bf16.msra.mxu1 %v598_v6 }
  0x14   :  { %556 = vmatprep.subr.bf16.mxu0 %v599_v7  ;;  %583 = vmatprep.subr.bf16.mxu1 %v599_v7 }
  0x17   :  { %557 = vmatpush3.bf16.msra.mxu0 %v599_v7  ;;  %591 = vmatpush3.bf16.msra.mxu1 %v599_v7 }
  0x18   :  { %558 = vmatprep.subr.bf16.mxu0 %v600_v8  ;;  %584 = vmatprep.subr.bf16.mxu1 %v600_v8 }
  0x1b   :  { %559 = vmatpush3.bf16.msra.mxu0 %v600_v8  ;;  %592 = vmatpush3.bf16.msra.mxu1 %v600_v8 }
  0x1c   :  { %560 = vmatprep.subr.bf16.mxu0 %v601_v9  ;;  %585 = vmatprep.subr.bf16.mxu1 %v601_v9 }
  0x1f   :  { %561 = vmatpush3.bf16.msra.mxu0 %v601_v9  ;;  %593 = vmatpush3.bf16.msra.mxu1 %v601_v9 }
  0x22   :  { %563 = vmatmul.mubr.bf16.vlgmr.msra.gmra.mxu0 %v604_v10  ;;  %571 = vmatmul.mubr.bf16.vlgmr.msra.gmra.mxu1 %v605_v11 }
  0x23   :  { %566 = vmatprep.mubr.bf16.mxu0 %v606_v12  ;;  %574 = vmatprep.mubr.bf16.mxu1 %v607_v13 }
  0x2a   :  { %567 = vmatmul.mubr.bf16.gmra.mxu0 %v608_v14  ;;  %575 = vmatmul.mubr.bf16.gmra.mxu1 %v609_v15 }
  0xe2   :  { %v564_v16 = vpop.f32.mrf.mxu0  ;;  %v572_v17 = vpop.f32.mrf.mxu1 }
  0xe3   :  { %v336_v23 = vadd.f32 %v564_v16, %v450_v18  ;;  %v344_v24 = vadd.f32 %v572_v17, %v450_v18 }
  0xe4   :  { %v213_v19 = vpop.f32.mrf.mxu0  ;;  %v245_v20 = vpop.f32.mrf.mxu1 }
  0xe5   :  { %v334_v27 = vadd.f32 %v450_v18, %v213_v19  ;;  %v342_v28 = vadd.f32 %v450_v18, %v245_v20 }
  0xe6   :  { %v565_v21 = vpop.f32.mrf.mxu0  ;;  %v573_v22 = vpop.f32.mrf.mxu1 }
  0xe7   :  { %v337_v25 = vadd.f32 %v565_v21, %v450_v18  ;;  %v345_v26 = vadd.f32 %v573_v22, %v450_v18 }
  0xe8   :  { %v216_v29 = vpop.f32.mrf.mxu0  ;;  %v248_v30 = vpop.f32.mrf.mxu1 }
  0xe9   :  { %v491_v31 = vpack.c.bf16 %v337_v25, %v336_v23  ;;  %v511_v32 = vpack.c.bf16 %v345_v26, %v344_v24  ;;  %v335_v33 = vadd.f32 %v450_v18, %v216_v29  ;;  %v343_v34 = vadd.f32 %v450_v18, %v248_v30 }
  0xea   :  { %v568_v35 = vpop.f32.mrf.mxu0  ;;  %v576_v36 = vpop.f32.mrf.mxu1 }
  0xeb   :  { %523 = vst [vmem:[%s708_s3 + $0x8] sm:$0xff] %v491_v31   ;;  %527 = vst [vmem:[%s708_s3 + $0x28] sm:$0xff] %v511_v32   ;;  %v486_v37 = vpack.c.bf16 %v335_v33, %v334_v27  ;;  %v506_v38 = vpack.c.bf16 %v343_v34, %v342_v28  ;;  %v340_v43 = vadd.f32 %v568_v35, %v450_v18 }
  0xec   :  { %v229_v39 = vpop.f32.mrf.mxu0  ;;  %v261_v40 = vpop.f32.mrf.mxu1  ;;  %v348_v44 = vadd.f32 %v576_v36, %v450_v18 }
  0xed   :  { %487 = vst [vmem:[%s708_s3] sm:$0xff] %v486_v37   ;;  %526 = vst [vmem:[%s708_s3 + $0x20] sm:$0xff] %v506_v38   ;;  %v338_v47 = vadd.f32 %v450_v18, %v229_v39  ;;  %v346_v48 = vadd.f32 %v450_v18, %v261_v40 }
  0xee   :  { %v569_v41 = vpop.f32.mrf.mxu0  ;;  %v577_v42 = vpop.f32.mrf.mxu1 }
  0xef   :  { %v341_v45 = vadd.f32 %v569_v41, %v450_v18  ;;  %v349_v46 = vadd.f32 %v577_v42, %v450_v18 }
  0xf0   :  { %v232_v49 = vpop.f32.mrf.mxu0  ;;  %v264_v50 = vpop.f32.mrf.mxu1 }
  0xf1   :  { %v501_v51 = vpack.c.bf16 %v341_v45, %v340_v43  ;;  %v521_v52 = vpack.c.bf16 %v349_v46, %v348_v44  ;;  %v339_v53 = vadd.f32 %v450_v18, %v232_v49  ;;  %v347_v54 = vadd.f32 %v450_v18, %v264_v50 }
  0xf3   :  { %525 = vst [vmem:[%s708_s3 + $0x18] sm:$0xff] %v501_v51   ;;  %529 = vst [vmem:[%s708_s3 + $0x38] sm:$0xff] %v521_v52   ;;  %v496_v55 = vpack.c.bf16 %v339_v53, %v338_v47  ;;  %v516_v56 = vpack.c.bf16 %v347_v54, %v346_v48 }
  0xf5   :  { %524 = vst [vmem:[%s708_s3 + $0x10] sm:$0xff] %v496_v55   ;;  %528 = vst [vmem:[%s708_s3 + $0x30] sm:$0xff] %v516_v56  }

// kernel: basic_block_enc_forward.3
= control target key start
LH: loop header
LB: loop body
LE: loop exit
PB: predicated region body
PF: predicated region fallthrough
CT: control target
= control target key end

     0   :  { %s1341_s12 = smov 0   ;;  %s1343_s13 = smov 0   ;;  %s1489_s0 = inlined_call_operand.vmem [shape: bf16[128,768], index: 0, kind: input, shape index: {}]   ;;  %s1490_s1 = inlined_call_operand.vmem [shape: bf16[768,128], index: 1, kind: input, shape index: {}]   ;;  %s1491_s2 = inlined_call_operand.vmem [shape: f32[1,128], index: 2, kind: input, shape index: {}]   ;;  %s1492_s3 = inlined_call_operand.vmem [shape: bf16[128,128], index: 3, kind: output, shape index: {}]  }
   0x1   :  { %s1345_s14 = smov 0   ;;  %s1347_s15 = smov 0  }
   0x2   :  { %s1349_s16 = smov 0  }
   0x3 LB: > { %s25_s17 = sadd.s32 1, %s1314_s15  ;;  %p48_p1 = scmp.ne.s32.totalorder %s1306_s13, %s1302_s12  ;;  %s1318_s16 = sphi %s1349_s16, %s13_s16   ;;  %s1314_s15 = sphi %s1347_s15, %s1496_s15   ;;  %s1310_s14 = sphi %s1345_s14, %s1495_s14   ;;  %s1306_s13 = sphi %s1343_s13, %s1494_s13   ;;  %s1302_s12 = sphi %s1341_s12, %s1493_s12  }
   0x4   : > { %p26_p0 = scmp.ge.s32.totalorder %s25_s17, 3  ;;  %p49_p2 = scmp.eq.s32.totalorder %s1318_s16, 0 }
   0x5   : > { %s41_s19 = sadd.s32 1, %s1306_s13  ;;  %p992_p5 = scmp.ge.s32.totalorder %s1318_s16, 3 }
   0x6   : > { %s1498_s17 = smov (%p26_p0, %s25_s17), 0  ;;  %p50_p3 = por %p49_p2, %p48_p1 }
   0x7   : > { %s37_s18 = ssub.s32 %s1314_s15, %s1498_s17  ;;  %162 = sbr.rel (%p992_p5) target bundleno = 24 (0x18), region = 20 }
   0x8   : > { %p39_p4 = scmp.eq.s32.totalorder %s37_s18, 0 }
   0xa   : > { %s1376_s20 = scalar_select %p39_p4, %s1306_s13, %s41_s19  }
   0xc   : > { %165 = sbr.rel (!%p50_p3) target bundleno = 24 (0x18), region = 24  ;;  %s167_s21 = sand.u32 (%p50_p3), 1, %s1306_s13  }
   0xd   : > { %s1055_s22 = sshll.u32 (%p50_p3), %s1314_s15, 3  ;;  %s993_s23 = sshll.u32 (%p50_p3), %s167_s21, 7 }
   0xe   : > { %s1384_s26 = scalar_lea.vmem (%p50_p3), %s1489_s0, %s1055_s22  ;;  %s169_s27 = scalar_lea.vmem (%p50_p3), [#allocation3], %s993_s23 }
   0xf   : > { %v234_v0 = vld [vmem:[%s1384_s26] sm:$0xff] (%p50_p3)  ;;  %v236_v1 = vld [vmem:[%s1384_s26 + $0x18] sm:$0xff] (%p50_p3)  ;;  %v238_v2 = vld [vmem:[%s1384_s26 + $0x30] sm:$0xff] (%p50_p3) }
  0x10   : > { %235 = vst [vmem:[%s169_s27] sm:$0xff] (%p50_p3), %v234_v0  ;;  %237 = vst [vmem:[%s169_s27 + $0x8] sm:$0xff] (%p50_p3), %v236_v1  ;;  %v240_v3 = vld [vmem:[%s1384_s26 + $0x48] sm:$0xff] (%p50_p3)  ;;  %v242_v4 = vld [vmem:[%s1384_s26 + $0x60] sm:$0xff] (%p50_p3) }
  0x11   : > { %239 = vst [vmem:[%s169_s27 + $0x10] sm:$0xff] %v238_v2  ;;  %v244_v5 = vld [vmem:[%s1384_s26 + $0x78] sm:$0xff]  ;;  %241 = vst [vmem:[%s169_s27 + $0x18] sm:$0xff] %v240_v3  ;;  %v246_v6 = vld [vmem:[%s1384_s26 + $0x90] sm:$0xff] }
  0x12   : > { %243 = vst [vmem:[%s169_s27 + $0x20] sm:$0xff] %v242_v4  ;;  %245 = vst [vmem:[%s169_s27 + $0x28] sm:$0xff] %v244_v5  ;;  %v248_v7 = vld [vmem:[%s1384_s26 + $0xa8] sm:$0xff]  ;;  %v250_v8 = vld [vmem:[%s1384_s26 + $0xc0] sm:$0xff] }
  0x13   : > { %247 = vst [vmem:[%s169_s27 + $0x30] sm:$0xff] %v246_v6  ;;  %249 = vst [vmem:[%s169_s27 + $0x38] sm:$0xff] %v248_v7  ;;  %v252_v9 = vld [vmem:[%s1384_s26 + $0xd8] sm:$0xff]  ;;  %v254_v10 = vld [vmem:[%s1384_s26 + $0xf0] sm:$0xff] }
  0x14   : > { %251 = vst [vmem:[%s169_s27 + $0x40] sm:$0xff] %v250_v8  ;;  %v256_v11 = vld [vmem:[%s1384_s26 + $0x108] sm:$0xff]  ;;  %253 = vst [vmem:[%s169_s27 + $0x48] sm:$0xff] %v252_v9  ;;  %v258_v12 = vld [vmem:[%s1384_s26 + $0x120] sm:$0xff] }
  0x15   : > { %255 = vst [vmem:[%s169_s27 + $0x50] sm:$0xff] %v254_v10  ;;  %257 = vst [vmem:[%s169_s27 + $0x58] sm:$0xff] %v256_v11  ;;  %v260_v13 = vld [vmem:[%s1384_s26 + $0x138] sm:$0xff]  ;;  %v262_v14 = vld [vmem:[%s1384_s26 + $0x150] sm:$0xff] }
  0x16   : > { %259 = vst [vmem:[%s169_s27 + $0x60] sm:$0xff] %v258_v12  ;;  %261 = vst [vmem:[%s169_s27 + $0x68] sm:$0xff] %v260_v13  ;;  %v264_v15 = vld [vmem:[%s1384_s26 + $0x168] sm:$0xff] }
  0x17   : > { %263 = vst [vmem:[%s169_s27 + $0x70] sm:$0xff] %v262_v14  ;;  %265 = vst [vmem:[%s169_s27 + $0x78] sm:$0xff] %v264_v15 }
  0x18 PF: > { %p996_p6 = scmp.ge.s32.totalorder %s1318_s16, 1  ;;  %p282_p7 = scmp.lt.s32.totalorder %s1318_s16, 4 }
  0x1a   : > { %p283_p8 = pnand %p996_p6, %p282_p7 }
  0x1b   : > { %s289_s28 = sand.u32 (!%p283_p8), 1, %s1302_s12   ;;  %s998_s29 = sshll.u32 (!%p283_p8), %s1310_s14, 5 }
  0x1c   : > { %286 = sbr.rel (%p283_p8) target bundleno = 324 (0x144), region = 66  ;;  %s997_s30 = sshll.u32 (!%p283_p8), %s289_s28, 7 }
  0x1d   : > { %p329_p9 = scmp.lt.s32.totalorder (!%p283_p8), %s998_s29, 95  ;;  %s1411_s8 = scalar_lea.vmem (!%p283_p8), [#allocation3], %s997_s30 }
  0x1e   : > { %p1000_p10 = scmp.ne.s32.totalorder (!%p283_p8), %s1310_s14, 0 }
  0x21   : > { %s1500_s29 = smov (!%p329_p9, %s998_s29), 95  ;;  %353 = sbr.rel (%p1000_p10) target bundleno = 47 (0x2f), region = 74 }
  0x22   : > { %s999_s4 = sshll.u32 %s1500_s29, 2 }
  0x23   : > { %s1409_s7 = scalar_lea.vmem %s1490_s1, %s999_s4 }
  0x26   : > { %v1320_v16 = vmov 0.0  }
  0x27   : > { %354 = vst [vmem:[#allocation2 + $0x30] sm:$0xff] %v1320_v16  ;;  %355 = vst [vmem:[#allocation2] sm:$0xff] %v1320_v16 }
  0x28   : > { %356 = vst [vmem:[#allocation2 + $0x58] sm:$0xff] %v1320_v16  ;;  %357 = vst [vmem:[#allocation2 + $0x18] sm:$0xff] %v1320_v16 }
  0x29   : > { %358 = vst [vmem:[#allocation2 + $0x50] sm:$0xff] %v1320_v16  ;;  %359 = vst [vmem:[#allocation2 + $0x68] sm:$0xff] %v1320_v16 }
  0x2a   : > { %360 = vst [vmem:[#allocation2 + $0x8] sm:$0xff] %v1320_v16  ;;  %361 = vst [vmem:[#allocation2 + $0x48] sm:$0xff] %v1320_v16 }
  0x2b   : > { %362 = vst [vmem:[#allocation2 + $0x40] sm:$0xff] %v1320_v16  ;;  %363 = vst [vmem:[#allocation2 + $0x20] sm:$0xff] %v1320_v16 }
  0x2c   : > { %364 = vst [vmem:[#allocation2 + $0x10] sm:$0xff] %v1320_v16  ;;  %365 = vst [vmem:[#allocation2 + $0x38] sm:$0xff] %v1320_v16 }
  0x2d   : > { %366 = vst [vmem:[#allocation2 + $0x60] sm:$0xff] %v1320_v16  ;;  %367 = vst [vmem:[#allocation2 + $0x70] sm:$0xff] %v1320_v16 }
  0x2e   : > { %368 = vst [vmem:[#allocation2 + $0x78] sm:$0xff] %v1320_v16  ;;  %369 = vst [vmem:[#allocation2 + $0x28] sm:$0xff] %v1320_v16 }
  0x2f PF: > { %v1240_v17 = vld [vmem:[%s1409_s7 + $0x78] sm:$0xff]   ;;  %v1242_v19 = vld [vmem:[%s1409_s7 + $0x70] sm:$0xff]   ;;  %v1244_v21 = vld [vmem:[%s1409_s7 + $0x68] sm:$0xff]   ;;  %p1033_p11 = scmp.ne.s32.totalorder %s1310_s14, 2 }
  0x30   : > { %v1241_v18 = vld [vmem:[%s1409_s7 + $0x38] sm:$0xff]   ;;  %1119 = vmatprep.subr.bf16.mxu0 %v1240_v17  ;;  %1183 = vmatprep.subr.bf16.mxu1 %v1240_v17  ;;  %v1243_v20 = vld [vmem:[%s1409_s7 + $0x30] sm:$0xff]   ;;  %v1245_v22 = vld [vmem:[%s1409_s7 + $0x28] sm:$0xff]  }
  0x31   : > { %1120 = vmatpush3.bf16.msra.mxu0 %v1241_v18  ;;  %1191 = vmatpush3.bf16.msra.mxu1 %v1241_v18  ;;  %v1246_v23 = vld [vmem:[%s1409_s7 + $0x60] sm:$0xff]   ;;  %v1248_v25 = vld [vmem:[%s1409_s7 + $0x58] sm:$0xff]   ;;  %v1250_v27 = vld [vmem:[%s1409_s7 + $0x50] sm:$0xff]  }
  0x32   : > { %1121 = vmatprep.subr.bf16.mxu0 %v1242_v19  ;;  %1184 = vmatprep.subr.bf16.mxu1 %v1242_v19  ;;  %v1247_v24 = vld [vmem:[%s1409_s7 + $0x20] sm:$0xff]   ;;  %v1249_v26 = vld [vmem:[%s1409_s7 + $0x18] sm:$0xff]   ;;  %v1251_v30 = vld [vmem:[%s1409_s7 + $0x10] sm:$0xff]  }
  0x33   : > { %v1258_v28 = vld [vmem:[%s1411_s8 + $0x4] ss:$8 sps:$4 sm:$0xff]   ;;  %v1256_v35 = vld [vmem:[%s1411_s8] ss:$8 sps:$4 sm:$0xff]   ;;  %v1262_v37 = vld [vmem:[%s1411_s8 + $0x14] ss:$8 sps:$4 sm:$0xff]  }
  0x34   : > { %v1261_v29 = vld [vmem:[%s1411_s8 + $0x44] ss:$8 sps:$4 sm:$0xff]   ;;  %642 = vmatprep.mubr.bf16.mxu0 %v1258_v28  ;;  %v1259_v36 = vld [vmem:[%s1411_s8 + $0x40] ss:$8 sps:$4 sm:$0xff]   ;;  %v1264_v38 = vld [vmem:[%s1411_s8 + $0x54] ss:$8 sps:$4 sm:$0xff]  }
  0x35   : > { %1122 = vmatpush3.bf16.msra.mxu0 %v1243_v20  ;;  %1192 = vmatpush3.bf16.msra.mxu1 %v1243_v20  ;;  %v1252_v31 = vld [vmem:[%s1409_s7 + $0x48] sm:$0xff]   ;;  %v1254_v33 = vld [vmem:[%s1409_s7 + $0x40] sm:$0xff]   ;;  %v1266_v39 = vld [vmem:[%s1411_s8 + $0x10] ss:$8 sps:$4 sm:$0xff]  }
  0x36   : > { %1123 = vmatprep.subr.bf16.mxu0 %v1244_v21  ;;  %1185 = vmatprep.subr.bf16.mxu1 %v1244_v21  ;;  %v1253_v32 = vld [vmem:[%s1409_s7 + $0x8] sm:$0xff]   ;;  %v1255_v34 = vld [vmem:[%s1409_s7] sm:$0xff]   ;;  %v1267_v40 = vld [vmem:[%s1411_s8 + $0x50] ss:$8 sps:$4 sm:$0xff]  }
  0x37   : > { %674 = vmatprep.mubr.bf16.mxu1 %v1261_v29  ;;  %v1268_v41 = vld [vmem:[%s1411_s8 + $0x24] ss:$8 sps:$4 sm:$0xff]   ;;  %v1272_v43 = vld [vmem:[%s1411_s8 + $0x20] ss:$8 sps:$4 sm:$0xff]   ;;  %v1274_v45 = vld [vmem:[%s1411_s8 + $0x34] ss:$8 sps:$4 sm:$0xff]  }
  0x38   : > { %v1270_v42 = vld [vmem:[%s1411_s8 + $0x64] ss:$8 sps:$4 sm:$0xff]   ;;  %v1273_v44 = vld [vmem:[%s1411_s8 + $0x60] ss:$8 sps:$4 sm:$0xff]   ;;  %v1276_v46 = vld [vmem:[%s1411_s8 + $0x74] ss:$8 sps:$4 sm:$0xff]  }
  0x39   : > { %1124 = vmatpush3.bf16.msra.mxu0 %v1245_v22  ;;  %1193 = vmatpush3.bf16.msra.mxu1 %v1245_v22  ;;  %v1278_v47 = vld [vmem:[%s1411_s8 + $0x30] ss:$8 sps:$4 sm:$0xff]   ;;  %v378_v53 = vld [vmem:[#allocation2 + $0x40] sm:$0xff] }
  0x3a   : > { %1125 = vmatprep.subr.bf16.mxu0 %v1246_v23  ;;  %1186 = vmatprep.subr.bf16.mxu1 %v1246_v23  ;;  %v1279_v48 = vld [vmem:[%s1411_s8 + $0x70] ss:$8 sps:$4 sm:$0xff]   ;;  %v371_v61 = vld [vmem:[#allocation2] sm:$0xff] }
  0x3b   : > { %v370_v51 = vld [vmem:[#allocation2 + $0x30] sm:$0xff]  ;;  %v379_v63 = vld [vmem:[#allocation2 + $0x20] sm:$0xff]  ;;  %v372_v7 = vld [vmem:[#allocation2 + $0x58] sm:$0xff] }
  0x3c   : > { %v380_v9 = vld [vmem:[#allocation2 + $0x10] sm:$0xff]  ;;  %v373_v17 = vld [vmem:[#allocation2 + $0x18] sm:$0xff]  ;;  %v382_v29 = vld [vmem:[#allocation2 + $0x60] sm:$0xff] }
  0x3d   : > { %1126 = vmatpush3.bf16.msra.mxu0 %v1247_v24  ;;  %1194 = vmatpush3.bf16.msra.mxu1 %v1247_v24  ;;  %v381_v19 = vld [vmem:[#allocation2 + $0x38] sm:$0xff] }
  0x3e   : > { %1127 = vmatprep.subr.bf16.mxu0 %v1248_v25  ;;  %1187 = vmatprep.subr.bf16.mxu1 %v1248_v25 }
  0x41   : > { %1128 = vmatpush3.bf16.msra.mxu0 %v1249_v26  ;;  %1195 = vmatpush3.bf16.msra.mxu1 %v1249_v26 }
  0x42   : > { %1129 = vmatprep.subr.bf16.mxu0 %v1250_v27  ;;  %1188 = vmatprep.subr.bf16.mxu1 %v1250_v27  ;;  %v374_v27 = vld [vmem:[#allocation2 + $0x50] sm:$0xff] }
  0x45   : > { %1130 = vmatpush3.bf16.msra.mxu0 %v1251_v30  ;;  %1196 = vmatpush3.bf16.msra.mxu1 %v1251_v30 }
  0x46   : > { %1131 = vmatprep.subr.bf16.mxu0 %v1252_v31  ;;  %1189 = vmatprep.subr.bf16.mxu1 %v1252_v31 }
  0x49   : > { %1132 = vmatpush3.bf16.msra.mxu0 %v1253_v32  ;;  %1197 = vmatpush3.bf16.msra.mxu1 %v1253_v32 }
  0x4a   : > { %1133 = vmatprep.subr.bf16.mxu0 %v1254_v33  ;;  %1190 = vmatprep.subr.bf16.mxu1 %v1254_v33 }
  0x4d   : > { %1134 = vmatpush3.bf16.msra.mxu0 %v1255_v34  ;;  %1198 = vmatpush3.bf16.msra.mxu1 %v1255_v34 }
  0x50   : > { %643 = vmatmul.mubr.bf16.vlgmr.msra.gmra.mxu0 %v1256_v35  ;;  %675 = vmatmul.mubr.bf16.vlgmr.msra.gmra.mxu1 %v1259_v36 }
  0x51   : > { %650 = vmatprep.mubr.bf16.mxu0 %v1262_v37  ;;  %682 = vmatprep.mubr.bf16.mxu1 %v1264_v38  ;;  %v375_v37 = vld [vmem:[#allocation2 + $0x68] sm:$0xff] }
  0x58   : > { %651 = vmatmul.mubr.bf16.gmra.mxu0 %v1266_v39  ;;  %683 = vmatmul.mubr.bf16.gmra.mxu1 %v1267_v40  ;;  %v383_v39 = vld [vmem:[#allocation2 + $0x70] sm:$0xff] }
  0x59   : > { %658 = vmatprep.mubr.bf16.mxu0 %v1268_v41  ;;  %690 = vmatprep.mubr.bf16.mxu1 %v1270_v42 }
  0x60   : > { %659 = vmatmul.mubr.bf16.gmra.mxu0 %v1272_v43  ;;  %691 = vmatmul.mubr.bf16.gmra.mxu1 %v1273_v44 }
  0x61   : > { %666 = vmatprep.mubr.bf16.mxu0 %v1274_v45  ;;  %698 = vmatprep.mubr.bf16.mxu1 %v1276_v46 }
  0x68   : > { %667 = vmatmul.mubr.bf16.gmra.mxu0 %v1278_v47  ;;  %699 = vmatmul.mubr.bf16.gmra.mxu1 %v1279_v48  ;;  %v376_v47 = vld [vmem:[#allocation2 + $0x8] sm:$0xff] }
 0x110   : > { %v1135_v49 = vpop.f32.mrf.mxu0  ;;  %v1159_v50 = vpop.f32.mrf.mxu1 }
 0x112   : > { %v1136_v52 = vpop.f32.mrf.mxu0  ;;  %v1160_v54 = vpop.f32.mrf.mxu1 }
 0x113   : > { %v1137_v55 = vadd.f32 %v1136_v52, %v1135_v49  ;;  %v1161_v56 = vadd.f32 %v1160_v54, %v1159_v50  ;;  %v384_v49 = vld [vmem:[#allocation2 + $0x78] sm:$0xff] }
 0x114   : > { %v1138_v57 = vpop.f32.mrf.mxu0  ;;  %v1162_v58 = vpop.f32.mrf.mxu1 }
 0x115   : > { %v707_v59 = vadd.f32 %v1137_v55, %v370_v51  ;;  %v715_v60 = vadd.f32 %v1161_v56, %v378_v53 }
 0x116   : > { %v1139_v62 = vpop.f32.mrf.mxu0  ;;  %v1163_v0 = vpop.f32.mrf.mxu1 }
 0x117   : > { %723 = vst [vmem:[#allocation2 + $0x30] sm:$0xff] %v707_v59  ;;  %731 = vst [vmem:[#allocation2 + $0x40] sm:$0xff] %v715_v60  ;;  %v1140_v1 = vadd.f32 %v1139_v62, %v1138_v57  ;;  %v1164_v2 = vadd.f32 %v1163_v0, %v1162_v58  ;;  %v377_v57 = vld [vmem:[#allocation2 + $0x48] sm:$0xff] }
 0x118   : > { %v1141_v3 = vpop.f32.mrf.mxu0  ;;  %v1165_v4 = vpop.f32.mrf.mxu1  ;;  %v385_v59 = vld [vmem:[#allocation2 + $0x28] sm:$0xff] }
 0x119   : > { %v708_v5 = vadd.f32 %v1140_v1, %v371_v61  ;;  %v716_v6 = vadd.f32 %v1164_v2, %v379_v63 }
 0x11a   : > { %v1142_v8 = vpop.f32.mrf.mxu0  ;;  %v1166_v10 = vpop.f32.mrf.mxu1 }
 0x11b   : > { %724 = vst [vmem:[#allocation2] sm:$0xff] %v708_v5  ;;  %732 = vst [vmem:[#allocation2 + $0x20] sm:$0xff] %v716_v6  ;;  %v1143_v11 = vadd.f32 %v1142_v8, %v1141_v3  ;;  %v1167_v12 = vadd.f32 %v1166_v10, %v1165_v4 }
 0x11c   : > { %v1144_v13 = vpop.f32.mrf.mxu0  ;;  %v1168_v14 = vpop.f32.mrf.mxu1 }
 0x11d   : > { %v709_v15 = vadd.f32 %v1143_v11, %v372_v7  ;;  %v717_v16 = vadd.f32 %v1167_v12, %v380_v9 }
 0x11e   : > { %v1145_v18 = vpop.f32.mrf.mxu0  ;;  %v1169_v20 = vpop.f32.mrf.mxu1 }
 0x11f   : > { %725 = vst [vmem:[#allocation2 + $0x58] sm:$0xff] %v709_v15  ;;  %733 = vst [vmem:[#allocation2 + $0x10] sm:$0xff] %v717_v16  ;;  %v1146_v21 = vadd.f32 %v1145_v18, %v1144_v13  ;;  %v1170_v22 = vadd.f32 %v1169_v20, %v1168_v14 }
 0x120   : > { %v1147_v23 = vpop.f32.mrf.mxu0  ;;  %v1171_v24 = vpop.f32.mrf.mxu1 }
 0x121   : > { %v710_v25 = vadd.f32 %v1146_v21, %v373_v17  ;;  %v718_v26 = vadd.f32 %v1170_v22, %v381_v19 }
 0x122   : > { %v1148_v28 = vpop.f32.mrf.mxu0  ;;  %v1172_v30 = vpop.f32.mrf.mxu1 }
 0x123   : > { %726 = vst [vmem:[#allocation2 + $0x18] sm:$0xff] %v710_v25  ;;  %734 = vst [vmem:[#allocation2 + $0x38] sm:$0xff] %v718_v26  ;;  %v1149_v31 = vadd.f32 %v1148_v28, %v1147_v23  ;;  %v1173_v32 = vadd.f32 %v1172_v30, %v1171_v24 }
 0x124   : > { %v1150_v33 = vpop.f32.mrf.mxu0  ;;  %v1174_v34 = vpop.f32.mrf.mxu1 }
 0x125   : > { %v711_v35 = vadd.f32 %v1149_v31, %v374_v27  ;;  %v719_v36 = vadd.f32 %v1173_v32, %v382_v29 }
 0x126   : > { %v1151_v38 = vpop.f32.mrf.mxu0  ;;  %v1175_v40 = vpop.f32.mrf.mxu1 }
 0x127   : > { %727 = vst [vmem:[#allocation2 + $0x50] sm:$0xff] %v711_v35  ;;  %735 = vst [vmem:[#allocation2 + $0x60] sm:$0xff] %v719_v36  ;;  %v1152_v41 = vadd.f32 %v1151_v38, %v1150_v33  ;;  %v1176_v42 = vadd.f32 %v1175_v40, %v1174_v34 }
 0x128   : > { %v1153_v43 = vpop.f32.mrf.mxu0  ;;  %v1177_v44 = vpop.f32.mrf.mxu1 }
 0x129   : > { %v712_v45 = vadd.f32 %v1152_v41, %v375_v37  ;;  %v720_v46 = vadd.f32 %v1176_v42, %v383_v39 }
 0x12a   : > { %v1154_v48 = vpop.f32.mrf.mxu0  ;;  %v1178_v50 = vpop.f32.mrf.mxu1 }
 0x12b   : > { %728 = vst [vmem:[#allocation2 + $0x68] sm:$0xff] %v712_v45  ;;  %736 = vst [vmem:[#allocation2 + $0x70] sm:$0xff] %v720_v46  ;;  %v1155_v51 = vadd.f32 %v1154_v48, %v1153_v43  ;;  %v1179_v52 = vadd.f32 %v1178_v50, %v1177_v44 }
 0x12c   : > { %v1156_v53 = vpop.f32.mrf.mxu0  ;;  %v1180_v54 = vpop.f32.mrf.mxu1 }
 0x12d   : > { %v713_v55 = vadd.f32 %v1155_v51, %v376_v47  ;;  %v721_v56 = vadd.f32 %v1179_v52, %v384_v49 }
 0x12e   : > { %v1157_v58 = vpop.f32.mrf.mxu0  ;;  %v1181_v60 = vpop.f32.mrf.mxu1 }
 0x12f   : > { %729 = vst [vmem:[#allocation2 + $0x8] sm:$0xff] %v713_v55  ;;  %737 = vst [vmem:[#allocation2 + $0x78] sm:$0xff] %v721_v56  ;;  %v1158_v61 = vadd.f32 %v1157_v58, %v1156_v53  ;;  %v1182_v62 = vadd.f32 %v1181_v60, %v1180_v54  ;;  %742 = sbr.rel (%p1033_p11) target bundleno = 324 (0x144), region = 78 }
 0x131   : > { %v714_v63 = vadd.f32 %v1158_v61, %v377_v57  ;;  %v722_v0 = vadd.f32 %v1182_v62, %v385_v59 }
 0x133   : > { %730 = vst [vmem:[#allocation2 + $0x48] sm:$0xff] %v714_v63  ;;  %738 = vst [vmem:[#allocation2 + $0x28] sm:$0xff] %v722_v0 }
 0x134   : > { %v743_v1 = vld [vmem:[#allocation2 + $0x30] sm:$0xff]  ;;  %v744_v2 = vld [vmem:[#allocation2] sm:$0xff]  ;;  %v745_v6 = vld [vmem:[#allocation2 + $0x58] sm:$0xff] }
 0x135   : > { %v1034_v3 = vld [vmem:[%s1491_s2] ss:$0 sm:$0xff]  ;;  %v746_v7 = vld [vmem:[#allocation2 + $0x18] sm:$0xff]  ;;  %v747_v8 = vld [vmem:[#allocation2 + $0x50] sm:$0xff] }
 0x136   : > { %v766_v4 = vadd.f32 %v1034_v3, %v743_v1  ;;  %v767_v5 = vadd.f32 %v1034_v3, %v744_v2  ;;  %v768_v9 = vadd.f32 %v1034_v3, %v745_v6  ;;  %v769_v10 = vadd.f32 %v1034_v3, %v746_v7  ;;  %v748_v11 = vld [vmem:[#allocation2 + $0x68] sm:$0xff]  ;;  %v751_v19 = vld [vmem:[#allocation2 + $0x40] sm:$0xff]  ;;  %v753_v21 = vld [vmem:[#allocation2 + $0x10] sm:$0xff] }
 0x137   : > { %v770_v12 = vadd.f32 %v1034_v3, %v747_v8  ;;  %v749_v13 = vld [vmem:[#allocation2 + $0x8] sm:$0xff]  ;;  %v771_v17 = vadd.f32 %v1034_v3, %v748_v11  ;;  %v752_v20 = vld [vmem:[#allocation2 + $0x20] sm:$0xff]  ;;  %v754_v26 = vld [vmem:[#allocation2 + $0x38] sm:$0xff]  ;;  %v774_v31 = vadd.f32 %v1034_v3, %v751_v19  ;;  %v776_v36 = vadd.f32 %v1034_v3, %v753_v21 }
 0x138   : > { %v782_v15 = vmax.f32 %v766_v4, 0.0  ;;  %v783_v16 = vmax.f32 %v767_v5, 0.0  ;;  %v772_v18 = vadd.f32 %v1034_v3, %v749_v13  ;;  %v784_v22 = vmax.f32 %v768_v9, 0.0  ;;  %v755_v27 = vld [vmem:[#allocation2 + $0x60] sm:$0xff]  ;;  %v756_v32 = vld [vmem:[#allocation2 + $0x70] sm:$0xff]  ;;  %v757_v37 = vld [vmem:[#allocation2 + $0x78] sm:$0xff] }
 0x139   : > { %v785_v23 = vmax.f32 %v769_v10, 0.0  ;;  %v786_v24 = vmax.f32 %v770_v12, 0.0  ;;  %v787_v29 = vmax.f32 %v771_v17, 0.0  ;;  %v775_v35 = vadd.f32 %v1034_v3, %v752_v20 }
 0x13a   : > { %v750_v14 = vld [vmem:[#allocation2 + $0x48] sm:$0xff]  ;;  %v1075_v28 = vpack.c.bf16 %v783_v16, %v782_v15  ;;  %v788_v30 = vmax.f32 %v772_v18, 0.0  ;;  %v790_v40 = vmax.f32 %v774_v31, 0.0  ;;  %v777_v41 = vadd.f32 %v1034_v3, %v754_v26 }
 0x13b   : > { %v773_v25 = vadd.f32 %v1034_v3, %v750_v14  ;;  %v1080_v33 = vpack.c.bf16 %v785_v23, %v784_v22  ;;  %v758_v38 = vld [vmem:[#allocation2 + $0x28] sm:$0xff]  ;;  %v1085_v39 = vpack.c.bf16 %v787_v29, %v786_v24  ;;  %v778_v42 = vadd.f32 %v1034_v3, %v755_v27 }
 0x13c   : > { %1076 = vst [vmem:[%s1492_s3] sm:$0xff] %v1075_v28   ;;  %v791_v44 = vmax.f32 %v775_v35, 0.0  ;;  %v792_v45 = vmax.f32 %v776_v36, 0.0  ;;  %v779_v46 = vadd.f32 %v1034_v3, %v756_v32  ;;  %v793_v47 = vmax.f32 %v777_v41, 0.0 }
 0x13d   : > { %v789_v34 = vmax.f32 %v773_v25, 0.0  ;;  %1112 = vst [vmem:[%s1492_s3 + $0x8] sm:$0xff] %v1080_v33   ;;  %1113 = vst [vmem:[%s1492_s3 + $0x10] sm:$0xff] %v1085_v39   ;;  %v794_v48 = vmax.f32 %v778_v42, 0.0  ;;  %v780_v49 = vadd.f32 %v1034_v3, %v757_v37  ;;  %v781_v50 = vadd.f32 %v1034_v3, %v758_v38 }
 0x13e   : > { %v1095_v51 = vpack.c.bf16 %v791_v44, %v790_v40  ;;  %v795_v52 = vmax.f32 %v779_v46, 0.0  ;;  %v1100_v53 = vpack.c.bf16 %v793_v47, %v792_v45 }
 0x13f   : > { %v1090_v43 = vpack.c.bf16 %v789_v34, %v788_v30  ;;  %v796_v54 = vmax.f32 %v780_v49, 0.0  ;;  %v797_v55 = vmax.f32 %v781_v50, 0.0 }
 0x140   : > { %1115 = vst [vmem:[%s1492_s3 + $0x20] sm:$0xff] %v1095_v51   ;;  %v1105_v56 = vpack.c.bf16 %v795_v52, %v794_v48  ;;  %1116 = vst [vmem:[%s1492_s3 + $0x28] sm:$0xff] %v1100_v53  }
 0x141   : > { %1114 = vst [vmem:[%s1492_s3 + $0x18] sm:$0xff] %v1090_v43   ;;  %v1110_v57 = vpack.c.bf16 %v797_v55, %v796_v54 }
 0x142   : > { %1117 = vst [vmem:[%s1492_s3 + $0x30] sm:$0xff] %v1105_v56  }
 0x143   : > { %1118 = vst [vmem:[%s1492_s3 + $0x38] sm:$0xff] %v1110_v57  }
 0x144 PF: > { %s13_s16 = sadd.s32 1, %s1318_s16   ;;  %s1493_s12 = smov %s1306_s13 }
 0x145   : > { %p10_p12 = scmp.ge.s32.totalorder %s13_s16, 5   ;;  %s1494_s13 = smov %s1376_s20 }
 0x146   : > { %s1495_s14 = smov %s1314_s15  ;;  %s1496_s15 = smov %s1498_s17 }
 0x147   :  { %12 = sbr.rel (!%p10_p12) target bundleno = 3 (0x3), region = 119 }

// kernel: basic_block_enc_forward.5
= control target key start
LH: loop header
LB: loop body
LE: loop exit
PB: predicated region body
PF: predicated region fallthrough
CT: control target
= control target key end

     0   :  { %9 = vsyncpa [#allocation5], 0  ;;  %s1387_s15 = smov 0   ;;  %s1389_s16 = smov 0   ;;  %s1571_s0 = inlined_call_operand.vmem [shape: bf16[128,1280], index: 0, kind: input, shape index: {}]   ;;  %s1572_s1 = inlined_call_operand.vmem [shape: bf16[1280,128], index: 1, kind: input, shape index: {}]   ;;  %s1573_s2 = inlined_call_operand.vmem [shape: f32[1,128], index: 2, kind: input, shape index: {}]   ;;  %s1574_s3 = inlined_call_operand.vmem [shape: bf16[128,128], index: 3, kind: input, shape index: {}]   ;;  %s1575_s4 = inlined_call_operand.hbm [shape: f32[128,128], index: 4, kind: output, shape index: {}]  }
   0x1   :  { %s1391_s17 = smov 0   ;;  %s1393_s18 = smov 0  }
   0x2   :  { %s1395_s19 = smov 0  }
   0x3 LB: > { %s1029_s20 = sadd.s32 4294967295, %s1356_s19   ;;  %s27_s21 = sadd.s32 1, %s1352_s18  ;;  %s1356_s19 = sphi %s1395_s19, %s15_s19   ;;  %s1352_s18 = sphi %s1393_s18, %s1580_s18   ;;  %s1348_s17 = sphi %s1391_s17, %s1579_s17   ;;  %s1344_s16 = sphi %s1389_s16, %s1578_s16   ;;  %s1340_s15 = sphi %s1387_s15, %s1577_s15  }
   0x4   : > { %p28_p0 = scmp.ge.s32.totalorder %s27_s21, 5  ;;  %p50_p1 = scmp.ne.s32.totalorder %s1344_s16, %s1340_s15 }
   0x5   : > { %p51_p2 = scmp.eq.s32.totalorder %s1356_s19, 0  ;;  %s43_s23 = sadd.s32 1, %s1344_s16 }
   0x6   : > { %s1582_s21 = smov (%p28_p0, %s27_s21), 0  ;;  %p1033_p5 = scmp.ge.s32.totalorder %s1356_s19, 5 }
   0x7   : > { %p52_p3 = por %p51_p2, %p50_p1  ;;  %s39_s22 = ssub.s32 %s1352_s18, %s1582_s21 }
   0x8   : > { %p41_p4 = scmp.eq.s32.totalorder %s39_s22, 0  ;;  %204 = sbr.rel (%p1033_p5) target bundleno = 25 (0x19), region = 24 }
   0xa   : > { %s1423_s24 = scalar_select %p41_p4, %s1344_s16, %s43_s23  }
   0xd   : > { %207 = sbr.rel (!%p52_p3) target bundleno = 25 (0x19), region = 28  ;;  %s209_s25 = sand.u32 (%p52_p3), 1, %s1344_s16  }
   0xe   : > { %s1080_s26 = sshll.u32 (%p52_p3), %s1352_s18, 3  ;;  %s1034_s27 = sshll.u32 (%p52_p3), %s209_s25, 7 }
   0xf   : > { %s1431_s30 = scalar_lea.vmem (%p52_p3), %s1571_s0, %s1080_s26  ;;  %s211_s5 = scalar_lea.vmem (%p52_p3), [#allocation3], %s1034_s27 }
  0x10   : > { %v276_v0 = vld [vmem:[%s1431_s30] sm:$0xff] (%p52_p3)  ;;  %v278_v1 = vld [vmem:[%s1431_s30 + $0x28] sm:$0xff] (%p52_p3)  ;;  %v280_v2 = vld [vmem:[%s1431_s30 + $0x50] sm:$0xff] (%p52_p3) }
  0x11   : > { %277 = vst [vmem:[%s211_s5] sm:$0xff] (%p52_p3), %v276_v0  ;;  %279 = vst [vmem:[%s211_s5 + $0x8] sm:$0xff] (%p52_p3), %v278_v1  ;;  %v282_v3 = vld [vmem:[%s1431_s30 + $0x78] sm:$0xff] (%p52_p3)  ;;  %v284_v4 = vld [vmem:[%s1431_s30 + $0xa0] sm:$0xff] (%p52_p3) }
  0x12   : > { %281 = vst [vmem:[%s211_s5 + $0x10] sm:$0xff] %v280_v2  ;;  %v286_v5 = vld [vmem:[%s1431_s30 + $0xc8] sm:$0xff]  ;;  %283 = vst [vmem:[%s211_s5 + $0x18] sm:$0xff] %v282_v3  ;;  %v288_v6 = vld [vmem:[%s1431_s30 + $0xf0] sm:$0xff] }
  0x13   : > { %285 = vst [vmem:[%s211_s5 + $0x20] sm:$0xff] %v284_v4  ;;  %287 = vst [vmem:[%s211_s5 + $0x28] sm:$0xff] %v286_v5  ;;  %v290_v7 = vld [vmem:[%s1431_s30 + $0x118] sm:$0xff]  ;;  %v292_v8 = vld [vmem:[%s1431_s30 + $0x140] sm:$0xff] }
  0x14   : > { %289 = vst [vmem:[%s211_s5 + $0x30] sm:$0xff] %v288_v6  ;;  %291 = vst [vmem:[%s211_s5 + $0x38] sm:$0xff] %v290_v7  ;;  %v294_v9 = vld [vmem:[%s1431_s30 + $0x168] sm:$0xff]  ;;  %v296_v10 = vld [vmem:[%s1431_s30 + $0x190] sm:$0xff] }
  0x15   : > { %293 = vst [vmem:[%s211_s5 + $0x40] sm:$0xff] %v292_v8  ;;  %v298_v11 = vld [vmem:[%s1431_s30 + $0x1b8] sm:$0xff]  ;;  %295 = vst [vmem:[%s211_s5 + $0x48] sm:$0xff] %v294_v9  ;;  %v300_v12 = vld [vmem:[%s1431_s30 + $0x1e0] sm:$0xff] }
  0x16   : > { %297 = vst [vmem:[%s211_s5 + $0x50] sm:$0xff] %v296_v10  ;;  %299 = vst [vmem:[%s211_s5 + $0x58] sm:$0xff] %v298_v11  ;;  %v302_v13 = vld [vmem:[%s1431_s30 + $0x208] sm:$0xff]  ;;  %v304_v14 = vld [vmem:[%s1431_s30 + $0x230] sm:$0xff] }
  0x17   : > { %301 = vst [vmem:[%s211_s5 + $0x60] sm:$0xff] %v300_v12  ;;  %303 = vst [vmem:[%s211_s5 + $0x68] sm:$0xff] %v302_v13  ;;  %v306_v15 = vld [vmem:[%s1431_s30 + $0x258] sm:$0xff] }
  0x18   : > { %305 = vst [vmem:[%s211_s5 + $0x70] sm:$0xff] %v304_v14  ;;  %307 = vst [vmem:[%s211_s5 + $0x78] sm:$0xff] %v306_v15 }
  0x19 PF: > { %p1037_p6 = scmp.ge.s32.totalorder %s1356_s19, 1  ;;  %p324_p7 = scmp.lt.s32.totalorder %s1356_s19, 6 }
  0x1b   : > { %p325_p8 = pnand %p1037_p6, %p324_p7 }
  0x1c   : > { %s331_s6 = sand.u32 (!%p325_p8), 1, %s1340_s15   ;;  %s1039_s7 = sshll.u32 (!%p325_p8), %s1348_s17, 5 }
  0x1d   : > { %328 = sbr.rel (%p325_p8) target bundleno = 347 (0x15b), region = 70  ;;  %s1038_s8 = sshll.u32 (!%p325_p8), %s331_s6, 7 }
  0x1e   : > { %p373_p9 = scmp.lt.s32.totalorder (!%p325_p8), %s1039_s7, 159  ;;  %s1458_s13 = scalar_lea.vmem (!%p325_p8), [#allocation3], %s1038_s8 }
  0x1f   : > { %p1041_p10 = scmp.ne.s32.totalorder (!%p325_p8), %s1348_s17, 0 }
  0x22   : > { %s1584_s7 = smov (!%p373_p9, %s1039_s7), 159  ;;  %398 = sbr.rel (%p1041_p10) target bundleno = 48 (0x30), region = 78 }
  0x23   : > { %s1040_s9 = sshll.u32 %s1584_s7, 2 }
  0x24   : > { %s1456_s12 = scalar_lea.vmem %s1572_s1, %s1040_s9 }
  0x27   : > { %v1358_v16 = vmov 0.0  }
  0x28   : > { %399 = vst [vmem:[#allocation2 + $0x30] sm:$0xff] %v1358_v16  ;;  %400 = vst [vmem:[#allocation2] sm:$0xff] %v1358_v16 }
  0x29   : > { %401 = vst [vmem:[#allocation2 + $0x58] sm:$0xff] %v1358_v16  ;;  %402 = vst [vmem:[#allocation2 + $0x18] sm:$0xff] %v1358_v16 }
  0x2a   : > { %403 = vst [vmem:[#allocation2 + $0x50] sm:$0xff] %v1358_v16  ;;  %404 = vst [vmem:[#allocation2 + $0x68] sm:$0xff] %v1358_v16 }
  0x2b   : > { %405 = vst [vmem:[#allocation2 + $0x8] sm:$0xff] %v1358_v16  ;;  %406 = vst [vmem:[#allocation2 + $0x48] sm:$0xff] %v1358_v16 }
  0x2c   : > { %407 = vst [vmem:[#allocation2 + $0x40] sm:$0xff] %v1358_v16  ;;  %408 = vst [vmem:[#allocation2 + $0x20] sm:$0xff] %v1358_v16 }
  0x2d   : > { %409 = vst [vmem:[#allocation2 + $0x10] sm:$0xff] %v1358_v16  ;;  %410 = vst [vmem:[#allocation2 + $0x38] sm:$0xff] %v1358_v16 }
  0x2e   : > { %411 = vst [vmem:[#allocation2 + $0x60] sm:$0xff] %v1358_v16  ;;  %412 = vst [vmem:[#allocation2 + $0x70] sm:$0xff] %v1358_v16 }
  0x2f   : > { %413 = vst [vmem:[#allocation2 + $0x78] sm:$0xff] %v1358_v16  ;;  %414 = vst [vmem:[#allocation2 + $0x28] sm:$0xff] %v1358_v16 }
  0x30 PF: > { %v1250_v17 = vld [vmem:[%s1456_s12 + $0x78] sm:$0xff]   ;;  %v1252_v19 = vld [vmem:[%s1456_s12 + $0x70] sm:$0xff]   ;;  %v1254_v21 = vld [vmem:[%s1456_s12 + $0x68] sm:$0xff]   ;;  %p1074_p11 = scmp.ne.s32.totalorder %s1348_s17, 4 }
  0x31   : > { %v1251_v18 = vld [vmem:[%s1456_s12 + $0x38] sm:$0xff]   ;;  %1120 = vmatprep.subr.bf16.mxu0 %v1250_v17  ;;  %1184 = vmatprep.subr.bf16.mxu1 %v1250_v17  ;;  %v1253_v20 = vld [vmem:[%s1456_s12 + $0x30] sm:$0xff]   ;;  %v1255_v22 = vld [vmem:[%s1456_s12 + $0x28] sm:$0xff]  }
  0x32   : > { %1121 = vmatpush3.bf16.msra.mxu0 %v1251_v18  ;;  %1192 = vmatpush3.bf16.msra.mxu1 %v1251_v18  ;;  %v1256_v23 = vld [vmem:[%s1456_s12 + $0x60] sm:$0xff]   ;;  %v1258_v25 = vld [vmem:[%s1456_s12 + $0x58] sm:$0xff]   ;;  %v1260_v27 = vld [vmem:[%s1456_s12 + $0x50] sm:$0xff]  }
  0x33   : > { %1122 = vmatprep.subr.bf16.mxu0 %v1252_v19  ;;  %1185 = vmatprep.subr.bf16.mxu1 %v1252_v19  ;;  %v1257_v24 = vld [vmem:[%s1456_s12 + $0x20] sm:$0xff]   ;;  %v1259_v26 = vld [vmem:[%s1456_s12 + $0x18] sm:$0xff]   ;;  %v1261_v30 = vld [vmem:[%s1456_s12 + $0x10] sm:$0xff]  }
  0x34   : > { %v1268_v28 = vld [vmem:[%s1458_s13 + $0x4] ss:$8 sps:$4 sm:$0xff]   ;;  %v1266_v35 = vld [vmem:[%s1458_s13] ss:$8 sps:$4 sm:$0xff]   ;;  %v1272_v37 = vld [vmem:[%s1458_s13 + $0x14] ss:$8 sps:$4 sm:$0xff]  }
  0x35   : > { %v1271_v29 = vld [vmem:[%s1458_s13 + $0x44] ss:$8 sps:$4 sm:$0xff]   ;;  %687 = vmatprep.mubr.bf16.mxu0 %v1268_v28  ;;  %v1269_v36 = vld [vmem:[%s1458_s13 + $0x40] ss:$8 sps:$4 sm:$0xff]   ;;  %v1274_v38 = vld [vmem:[%s1458_s13 + $0x54] ss:$8 sps:$4 sm:$0xff]  }
  0x36   : > { %1123 = vmatpush3.bf16.msra.mxu0 %v1253_v20  ;;  %1193 = vmatpush3.bf16.msra.mxu1 %v1253_v20  ;;  %v1262_v31 = vld [vmem:[%s1456_s12 + $0x48] sm:$0xff]   ;;  %v1264_v33 = vld [vmem:[%s1456_s12 + $0x40] sm:$0xff]   ;;  %v1276_v39 = vld [vmem:[%s1458_s13 + $0x10] ss:$8 sps:$4 sm:$0xff]  }
  0x37   : > { %1124 = vmatprep.subr.bf16.mxu0 %v1254_v21  ;;  %1186 = vmatprep.subr.bf16.mxu1 %v1254_v21  ;;  %v1263_v32 = vld [vmem:[%s1456_s12 + $0x8] sm:$0xff]   ;;  %v1265_v34 = vld [vmem:[%s1456_s12] sm:$0xff]   ;;  %v1277_v40 = vld [vmem:[%s1458_s13 + $0x50] ss:$8 sps:$4 sm:$0xff]  }
  0x38   : > { %719 = vmatprep.mubr.bf16.mxu1 %v1271_v29  ;;  %v1278_v41 = vld [vmem:[%s1458_s13 + $0x24] ss:$8 sps:$4 sm:$0xff]   ;;  %v1282_v43 = vld [vmem:[%s1458_s13 + $0x20] ss:$8 sps:$4 sm:$0xff]   ;;  %v1284_v45 = vld [vmem:[%s1458_s13 + $0x34] ss:$8 sps:$4 sm:$0xff]  }
  0x39   : > { %v1280_v42 = vld [vmem:[%s1458_s13 + $0x64] ss:$8 sps:$4 sm:$0xff]   ;;  %v1283_v44 = vld [vmem:[%s1458_s13 + $0x60] ss:$8 sps:$4 sm:$0xff]   ;;  %v1286_v46 = vld [vmem:[%s1458_s13 + $0x74] ss:$8 sps:$4 sm:$0xff]  }
  0x3a   : > { %1125 = vmatpush3.bf16.msra.mxu0 %v1255_v22  ;;  %1194 = vmatpush3.bf16.msra.mxu1 %v1255_v22  ;;  %v1288_v47 = vld [vmem:[%s1458_s13 + $0x30] ss:$8 sps:$4 sm:$0xff]   ;;  %v423_v53 = vld [vmem:[#allocation2 + $0x40] sm:$0xff] }
  0x3b   : > { %1126 = vmatprep.subr.bf16.mxu0 %v1256_v23  ;;  %1187 = vmatprep.subr.bf16.mxu1 %v1256_v23  ;;  %v1289_v48 = vld [vmem:[%s1458_s13 + $0x70] ss:$8 sps:$4 sm:$0xff]   ;;  %v416_v61 = vld [vmem:[#allocation2] sm:$0xff] }
  0x3c   : > { %v415_v51 = vld [vmem:[#allocation2 + $0x30] sm:$0xff]  ;;  %v424_v63 = vld [vmem:[#allocation2 + $0x20] sm:$0xff]  ;;  %v417_v7 = vld [vmem:[#allocation2 + $0x58] sm:$0xff] }
  0x3d   : > { %v425_v9 = vld [vmem:[#allocation2 + $0x10] sm:$0xff]  ;;  %v418_v17 = vld [vmem:[#allocation2 + $0x18] sm:$0xff]  ;;  %v427_v29 = vld [vmem:[#allocation2 + $0x60] sm:$0xff] }
  0x3e   : > { %1127 = vmatpush3.bf16.msra.mxu0 %v1257_v24  ;;  %1195 = vmatpush3.bf16.msra.mxu1 %v1257_v24  ;;  %v426_v19 = vld [vmem:[#allocation2 + $0x38] sm:$0xff] }
  0x3f   : > { %1128 = vmatprep.subr.bf16.mxu0 %v1258_v25  ;;  %1188 = vmatprep.subr.bf16.mxu1 %v1258_v25 }
  0x42   : > { %1129 = vmatpush3.bf16.msra.mxu0 %v1259_v26  ;;  %1196 = vmatpush3.bf16.msra.mxu1 %v1259_v26 }
  0x43   : > { %1130 = vmatprep.subr.bf16.mxu0 %v1260_v27  ;;  %1189 = vmatprep.subr.bf16.mxu1 %v1260_v27  ;;  %v419_v27 = vld [vmem:[#allocation2 + $0x50] sm:$0xff] }
  0x46   : > { %1131 = vmatpush3.bf16.msra.mxu0 %v1261_v30  ;;  %1197 = vmatpush3.bf16.msra.mxu1 %v1261_v30 }
  0x47   : > { %1132 = vmatprep.subr.bf16.mxu0 %v1262_v31  ;;  %1190 = vmatprep.subr.bf16.mxu1 %v1262_v31 }
  0x4a   : > { %1133 = vmatpush3.bf16.msra.mxu0 %v1263_v32  ;;  %1198 = vmatpush3.bf16.msra.mxu1 %v1263_v32 }
  0x4b   : > { %1134 = vmatprep.subr.bf16.mxu0 %v1264_v33  ;;  %1191 = vmatprep.subr.bf16.mxu1 %v1264_v33 }
  0x4e   : > { %1135 = vmatpush3.bf16.msra.mxu0 %v1265_v34  ;;  %1199 = vmatpush3.bf16.msra.mxu1 %v1265_v34 }
  0x51   : > { %688 = vmatmul.mubr.bf16.vlgmr.msra.gmra.mxu0 %v1266_v35  ;;  %720 = vmatmul.mubr.bf16.vlgmr.msra.gmra.mxu1 %v1269_v36 }
  0x52   : > { %695 = vmatprep.mubr.bf16.mxu0 %v1272_v37  ;;  %727 = vmatprep.mubr.bf16.mxu1 %v1274_v38  ;;  %v420_v37 = vld [vmem:[#allocation2 + $0x68] sm:$0xff] }
  0x59   : > { %696 = vmatmul.mubr.bf16.gmra.mxu0 %v1276_v39  ;;  %728 = vmatmul.mubr.bf16.gmra.mxu1 %v1277_v40  ;;  %v428_v39 = vld [vmem:[#allocation2 + $0x70] sm:$0xff] }
  0x5a   : > { %703 = vmatprep.mubr.bf16.mxu0 %v1278_v41  ;;  %735 = vmatprep.mubr.bf16.mxu1 %v1280_v42 }
  0x61   : > { %704 = vmatmul.mubr.bf16.gmra.mxu0 %v1282_v43  ;;  %736 = vmatmul.mubr.bf16.gmra.mxu1 %v1283_v44 }
  0x62   : > { %711 = vmatprep.mubr.bf16.mxu0 %v1284_v45  ;;  %743 = vmatprep.mubr.bf16.mxu1 %v1286_v46 }
  0x69   : > { %712 = vmatmul.mubr.bf16.gmra.mxu0 %v1288_v47  ;;  %744 = vmatmul.mubr.bf16.gmra.mxu1 %v1289_v48  ;;  %v421_v47 = vld [vmem:[#allocation2 + $0x8] sm:$0xff] }
 0x111   : > { %v1136_v49 = vpop.f32.mrf.mxu0  ;;  %v1160_v50 = vpop.f32.mrf.mxu1 }
 0x113   : > { %v1137_v52 = vpop.f32.mrf.mxu0  ;;  %v1161_v54 = vpop.f32.mrf.mxu1 }
 0x114   : > { %v1138_v55 = vadd.f32 %v1137_v52, %v1136_v49  ;;  %v1162_v56 = vadd.f32 %v1161_v54, %v1160_v50  ;;  %v429_v49 = vld [vmem:[#allocation2 + $0x78] sm:$0xff] }
 0x115   : > { %v1139_v57 = vpop.f32.mrf.mxu0  ;;  %v1163_v58 = vpop.f32.mrf.mxu1 }
 0x116   : > { %v752_v59 = vadd.f32 %v1138_v55, %v415_v51  ;;  %v760_v60 = vadd.f32 %v1162_v56, %v423_v53 }
 0x117   : > { %v1140_v62 = vpop.f32.mrf.mxu0  ;;  %v1164_v0 = vpop.f32.mrf.mxu1 }
 0x118   : > { %768 = vst [vmem:[#allocation2 + $0x30] sm:$0xff] %v752_v59  ;;  %776 = vst [vmem:[#allocation2 + $0x40] sm:$0xff] %v760_v60  ;;  %v1141_v1 = vadd.f32 %v1140_v62, %v1139_v57  ;;  %v1165_v2 = vadd.f32 %v1164_v0, %v1163_v58  ;;  %v422_v57 = vld [vmem:[#allocation2 + $0x48] sm:$0xff] }
 0x119   : > { %v1142_v3 = vpop.f32.mrf.mxu0  ;;  %v1166_v4 = vpop.f32.mrf.mxu1  ;;  %v430_v59 = vld [vmem:[#allocation2 + $0x28] sm:$0xff] }
 0x11a   : > { %v753_v5 = vadd.f32 %v1141_v1, %v416_v61  ;;  %v761_v6 = vadd.f32 %v1165_v2, %v424_v63 }
 0x11b   : > { %v1143_v8 = vpop.f32.mrf.mxu0  ;;  %v1167_v10 = vpop.f32.mrf.mxu1 }
 0x11c   : > { %769 = vst [vmem:[#allocation2] sm:$0xff] %v753_v5  ;;  %777 = vst [vmem:[#allocation2 + $0x20] sm:$0xff] %v761_v6  ;;  %v1144_v11 = vadd.f32 %v1143_v8, %v1142_v3  ;;  %v1168_v12 = vadd.f32 %v1167_v10, %v1166_v4 }
 0x11d   : > { %v1145_v13 = vpop.f32.mrf.mxu0  ;;  %v1169_v14 = vpop.f32.mrf.mxu1 }
 0x11e   : > { %v754_v15 = vadd.f32 %v1144_v11, %v417_v7  ;;  %v762_v16 = vadd.f32 %v1168_v12, %v425_v9 }
 0x11f   : > { %v1146_v18 = vpop.f32.mrf.mxu0  ;;  %v1170_v20 = vpop.f32.mrf.mxu1 }
 0x120   : > { %770 = vst [vmem:[#allocation2 + $0x58] sm:$0xff] %v754_v15  ;;  %778 = vst [vmem:[#allocation2 + $0x10] sm:$0xff] %v762_v16  ;;  %v1147_v21 = vadd.f32 %v1146_v18, %v1145_v13  ;;  %v1171_v22 = vadd.f32 %v1170_v20, %v1169_v14 }
 0x121   : > { %v1148_v23 = vpop.f32.mrf.mxu0  ;;  %v1172_v24 = vpop.f32.mrf.mxu1 }
 0x122   : > { %v755_v25 = vadd.f32 %v1147_v21, %v418_v17  ;;  %v763_v26 = vadd.f32 %v1171_v22, %v426_v19 }
 0x123   : > { %v1149_v28 = vpop.f32.mrf.mxu0  ;;  %v1173_v30 = vpop.f32.mrf.mxu1 }
 0x124   : > { %771 = vst [vmem:[#allocation2 + $0x18] sm:$0xff] %v755_v25  ;;  %779 = vst [vmem:[#allocation2 + $0x38] sm:$0xff] %v763_v26  ;;  %v1150_v31 = vadd.f32 %v1149_v28, %v1148_v23  ;;  %v1174_v32 = vadd.f32 %v1173_v30, %v1172_v24 }
 0x125   : > { %v1151_v33 = vpop.f32.mrf.mxu0  ;;  %v1175_v34 = vpop.f32.mrf.mxu1 }
 0x126   : > { %v756_v35 = vadd.f32 %v1150_v31, %v419_v27  ;;  %v764_v36 = vadd.f32 %v1174_v32, %v427_v29 }
 0x127   : > { %v1152_v38 = vpop.f32.mrf.mxu0  ;;  %v1176_v40 = vpop.f32.mrf.mxu1 }
 0x128   : > { %772 = vst [vmem:[#allocation2 + $0x50] sm:$0xff] %v756_v35  ;;  %780 = vst [vmem:[#allocation2 + $0x60] sm:$0xff] %v764_v36  ;;  %v1153_v41 = vadd.f32 %v1152_v38, %v1151_v33  ;;  %v1177_v42 = vadd.f32 %v1176_v40, %v1175_v34 }
 0x129   : > { %v1154_v43 = vpop.f32.mrf.mxu0  ;;  %v1178_v44 = vpop.f32.mrf.mxu1 }
 0x12a   : > { %v757_v45 = vadd.f32 %v1153_v41, %v420_v37  ;;  %v765_v46 = vadd.f32 %v1177_v42, %v428_v39 }
 0x12b   : > { %v1155_v48 = vpop.f32.mrf.mxu0  ;;  %v1179_v50 = vpop.f32.mrf.mxu1 }
 0x12c   : > { %773 = vst [vmem:[#allocation2 + $0x68] sm:$0xff] %v757_v45  ;;  %781 = vst [vmem:[#allocation2 + $0x70] sm:$0xff] %v765_v46  ;;  %v1156_v51 = vadd.f32 %v1155_v48, %v1154_v43  ;;  %v1180_v52 = vadd.f32 %v1179_v50, %v1178_v44 }
 0x12d   : > { %v1157_v53 = vpop.f32.mrf.mxu0  ;;  %v1181_v54 = vpop.f32.mrf.mxu1 }
 0x12e   : > { %v758_v55 = vadd.f32 %v1156_v51, %v421_v47  ;;  %v766_v56 = vadd.f32 %v1180_v52, %v429_v49 }
 0x12f   : > { %v1158_v58 = vpop.f32.mrf.mxu0  ;;  %v1182_v60 = vpop.f32.mrf.mxu1 }
 0x130   : > { %774 = vst [vmem:[#allocation2 + $0x8] sm:$0xff] %v758_v55  ;;  %782 = vst [vmem:[#allocation2 + $0x78] sm:$0xff] %v766_v56  ;;  %v1159_v61 = vadd.f32 %v1158_v58, %v1157_v53  ;;  %v1183_v62 = vadd.f32 %v1182_v60, %v1181_v54  ;;  %787 = sbr.rel (%p1074_p11) target bundleno = 331 (0x14b), region = 82 }
 0x132   : > { %v759_v63 = vadd.f32 %v1159_v61, %v422_v57  ;;  %v767_v0 = vadd.f32 %v1183_v62, %v430_v59 }
 0x134   : > { %775 = vst [vmem:[#allocation2 + $0x48] sm:$0xff] %v759_v63  ;;  %783 = vst [vmem:[#allocation2 + $0x28] sm:$0xff] %v767_v0 }
 0x135   : > { %v788_v1 = vld [vmem:[#allocation2 + $0x30] sm:$0xff]  ;;  %v1497_v2 = vld [vmem:[%s1573_s2] ss:$0 sm:$0xff]  ;;  %v790_v8 = vld [vmem:[#allocation2 + $0x58] sm:$0xff] }
 0x136   : > { %v1082_v3 = vld [vmem:[%s1574_s3] sm:$0xff]   ;;  %v811_v4 = vadd.f32 %v1497_v2, %v788_v1  ;;  %v1113_v9 = vld [vmem:[%s1574_s3 + $0x8] sm:$0xff]   ;;  %v813_v11 = vadd.f32 %v1497_v2, %v790_v8  ;;  %v791_v13 = vld [vmem:[#allocation2 + $0x18] sm:$0xff] }
 0x137   : > { %v1083_v5 = vunpack.c.l.bf16 %v1082_v3  ;;  %v789_v6 = vld [vmem:[#allocation2] sm:$0xff]  ;;  %v1084_v7 = vunpack.c.h.bf16 %v1082_v3  ;;  %v1087_v12 = vunpack.c.l.bf16 %v1113_v9  ;;  %v1088_v14 = vunpack.c.h.bf16 %v1113_v9  ;;  %v792_v15 = vld [vmem:[#allocation2 + $0x50] sm:$0xff]  ;;  %v793_v21 = vld [vmem:[#allocation2 + $0x68] sm:$0xff] }
 0x138   : > { %v812_v10 = vadd.f32 %v1497_v2, %v789_v6  ;;  %v1114_v16 = vld [vmem:[%s1574_s3 + $0x10] sm:$0xff]   ;;  %v814_v18 = vadd.f32 %v1497_v2, %v791_v13  ;;  %v815_v19 = vadd.f32 %v1497_v2, %v792_v15  ;;  %v794_v22 = vld [vmem:[#allocation2 + $0x8] sm:$0xff]  ;;  %v1115_v23 = vld [vmem:[%s1574_s3 + $0x18] sm:$0xff]   ;;  %v816_v26 = vadd.f32 %v1497_v2, %v793_v21 }
 0x139   : > { %v859_v17 = vadd.f32 %v1083_v5, %v811_v4  ;;  %v1091_v20 = vunpack.c.l.bf16 %v1114_v16  ;;  %v861_v25 = vadd.f32 %v1087_v12, %v813_v11  ;;  %v1092_v27 = vunpack.c.h.bf16 %v1114_v16  ;;  %v796_v33 = vld [vmem:[#allocation2 + $0x40] sm:$0xff]  ;;  %v798_v40 = vld [vmem:[#allocation2 + $0x10] sm:$0xff]  ;;  %v1117_v45 = vld [vmem:[%s1574_s3 + $0x28] sm:$0xff]  }
 0x13a   : > { %v860_v24 = vadd.f32 %v1084_v7, %v812_v10  ;;  %v862_v30 = vadd.f32 %v1088_v14, %v814_v18  ;;  %v817_v32 = vadd.f32 %v1497_v2, %v794_v22  ;;  %v1116_v34 = vld [vmem:[%s1574_s3 + $0x20] sm:$0xff]   ;;  %v1095_v38 = vunpack.c.l.bf16 %v1115_v23  ;;  %v799_v46 = vld [vmem:[#allocation2 + $0x38] sm:$0xff]  ;;  %v1118_v56 = vld [vmem:[%s1574_s3 + $0x30] sm:$0xff]  }
 0x13b   : > { %v795_v28 = vld [vmem:[#allocation2 + $0x48] sm:$0xff]  ;;  %v875_v29 = vmax.f32 %v859_v17, 0.0  ;;  %v863_v31 = vadd.f32 %v1091_v20, %v815_v19  ;;  %v877_v36 = vmax.f32 %v861_v25, 0.0  ;;  %v864_v37 = vadd.f32 %v1092_v27, %v816_v26  ;;  %v797_v39 = vld [vmem:[#allocation2 + $0x20] sm:$0xff]  ;;  %v801_v57 = vld [vmem:[#allocation2 + $0x70] sm:$0xff] }
 0x13c   : > { %v876_v35 = vmax.f32 %v860_v24, 0.0  ;;  %v878_v41 = vmax.f32 %v862_v30, 0.0  ;;  %v818_v43 = vadd.f32 %v1497_v2, %v795_v28  ;;  %v1096_v44 = vunpack.c.h.bf16 %v1115_v23  ;;  %v800_v51 = vld [vmem:[#allocation2 + $0x60] sm:$0xff]  ;;  %v802_v62 = vld [vmem:[#allocation2 + $0x78] sm:$0xff]  ;;  %v803_v5 = vld [vmem:[#allocation2 + $0x28] sm:$0xff] }
 0x13d   : > { %891 = vst [vmem:[#allocation4] sm:$0xff] %v875_v29  ;;  %v879_v42 = vmax.f32 %v863_v31, 0.0  ;;  %893 = vst [vmem:[#allocation4 + $0x10] sm:$0xff] %v877_v36  ;;  %v880_v47 = vmax.f32 %v864_v37, 0.0  ;;  %v865_v48 = vadd.f32 %v1095_v38, %v817_v32  ;;  %v819_v49 = vadd.f32 %v1497_v2, %v796_v33  ;;  %v1119_v4 = vld [vmem:[%s1574_s3 + $0x38] sm:$0xff]  }
 0x13e   : > { %892 = vst [vmem:[#allocation4 + $0x8] sm:$0xff] %v876_v35  ;;  %v1099_v50 = vunpack.c.l.bf16 %v1116_v34  ;;  %894 = vst [vmem:[#allocation4 + $0x18] sm:$0xff] %v878_v41  ;;  %v866_v52 = vadd.f32 %v1096_v44, %v818_v43  ;;  %v820_v53 = vadd.f32 %v1497_v2, %v797_v39  ;;  %v1100_v54 = vunpack.c.h.bf16 %v1116_v34 }
 0x13f   : > { %895 = vst [vmem:[#allocation4 + $0x20] sm:$0xff] %v879_v42  ;;  %v821_v55 = vadd.f32 %v1497_v2, %v798_v40  ;;  %896 = vst [vmem:[#allocation4 + $0x28] sm:$0xff] %v880_v47  ;;  %v881_v58 = vmax.f32 %v865_v48, 0.0  ;;  %v1103_v60 = vunpack.c.l.bf16 %v1117_v45  ;;  %v822_v61 = vadd.f32 %v1497_v2, %v799_v46 }
 0x140   : > { %v867_v59 = vadd.f32 %v1099_v50, %v819_v49  ;;  %v882_v63 = vmax.f32 %v866_v52, 0.0  ;;  %v868_v0 = vadd.f32 %v1100_v54, %v820_v53  ;;  %v1104_v1 = vunpack.c.h.bf16 %v1117_v45 }
 0x141   : > { %v823_v3 = vadd.f32 %v1497_v2, %v800_v51  ;;  %897 = vst [vmem:[#allocation4 + $0x30] sm:$0xff] %v881_v58  ;;  %v869_v7 = vadd.f32 %v1103_v60, %v821_v55  ;;  %v1107_v8 = vunpack.c.l.bf16 %v1118_v56  ;;  %v824_v9 = vadd.f32 %v1497_v2, %v801_v57 }
 0x142   : > { %v883_v6 = vmax.f32 %v867_v59, 0.0  ;;  %898 = vst [vmem:[#allocation4 + $0x38] sm:$0xff] %v882_v63  ;;  %v884_v10 = vmax.f32 %v868_v0, 0.0  ;;  %v870_v11 = vadd.f32 %v1104_v1, %v822_v61  ;;  %v1108_v12 = vunpack.c.h.bf16 %v1118_v56 }
 0x143   : > { %v825_v13 = vadd.f32 %v1497_v2, %v802_v62  ;;  %v885_v14 = vmax.f32 %v869_v7, 0.0  ;;  %v871_v15 = vadd.f32 %v1107_v8, %v823_v3  ;;  %v1111_v16 = vunpack.c.l.bf16 %v1119_v4 }
 0x144   : > { %899 = vst [vmem:[#allocation4 + $0x40] sm:$0xff] %v883_v6  ;;  %v826_v17 = vadd.f32 %v1497_v2, %v803_v5  ;;  %900 = vst [vmem:[#allocation4 + $0x48] sm:$0xff] %v884_v10  ;;  %v886_v18 = vmax.f32 %v870_v11, 0.0  ;;  %v872_v19 = vadd.f32 %v1108_v12, %v824_v9  ;;  %v1112_v20 = vunpack.c.h.bf16 %v1119_v4 }
 0x145   : > { %901 = vst [vmem:[#allocation4 + $0x50] sm:$0xff] %v885_v14  ;;  %v887_v21 = vmax.f32 %v871_v15, 0.0  ;;  %v873_v22 = vadd.f32 %v1111_v16, %v825_v13 }
 0x146   : > { %902 = vst [vmem:[#allocation4 + $0x58] sm:$0xff] %v886_v18  ;;  %v888_v23 = vmax.f32 %v872_v19, 0.0  ;;  %v874_v24 = vadd.f32 %v1112_v20, %v826_v17 }
 0x147   : > { %903 = vst [vmem:[#allocation4 + $0x60] sm:$0xff] %v887_v21  ;;  %v889_v25 = vmax.f32 %v873_v22, 0.0 }
 0x148   : > { %904 = vst [vmem:[#allocation4 + $0x68] sm:$0xff] %v888_v23  ;;  %v890_v26 = vmax.f32 %v874_v24, 0.0 }
 0x149   : > { %905 = vst [vmem:[#allocation4 + $0x70] sm:$0xff] %v889_v25 }
 0x14a   : > { %906 = vst [vmem:[#allocation4 + $0x78] sm:$0xff] %v890_v26 }
 0x14b PF: > { %p1541_p12 = scmp.eq.s32.totalorder %s1029_s20, 4  ;;  %s1359_s13 = smov [#allocation4]  }
 0x14c   : > { %s917_s14 = sshll.u32 %s1359_s13, 4  ;;  %s918_s14 = int_to_ptr.vmem [resolvable:$true] %s917_s14 }
 0x14d   : > { %s1290_s15 = scalar_lea.vmem %s918_s14, 2048  ;;  %p1297_p2 = scmp.lt.s32.totalorder %s918_s14, %s918_s14 }
 0x14e   : > { %p1291_p13 = scmp.ne.s32.totalorder %s918_s14, %s1290_s15  ;;  %p1298_p3 = scmp.lt.s32.totalorder %s1290_s15, %s1290_s15 }
 0x150   : > { %p1292_p0 = pnand %p1291_p13, %p1541_p12  ;;  %p1299_p4 = por %p1298_p3, %p1297_p2 }
 0x152   : > { %p1293_p1 = pneg %p1292_p0 }
 0x154   : > { %p1300_p5 = pnand %p1299_p4, %p1293_p1 }
 0x156   : > { %1303 = shalt.err (!%p1300_p5)
}
 0x157   : > { %s1360_s22 = smov 128   ;;  %s1361_s20 = smov 8  }
 0x158   : > { %1201 = dma.vmem_to_hbm [thread:$0]  (%p1541_p12), %s918_s14, 2048, %s1575_s4, [#allocation5], %s1360_s22, %s1360_s22, %s1361_s20  }
 0x159   : > { %1335 = dma.done.wait (%p1541_p12), [#allocation5], 2048  }
 0x15a   : > { %1337 = vsyncadd (%p1541_p12), [#allocation5], 4294965248 }
 0x15b PF: > { %s15_s19 = sadd.s32 1, %s1356_s19   ;;  %s1577_s15 = smov %s1344_s16 }
 0x15c   : > { %p12_p6 = scmp.ge.s32.totalorder %s15_s19, 7   ;;  %s1578_s16 = smov %s1423_s24 }
 0x15d   : > { %s1579_s17 = smov %s1352_s18  ;;  %s1580_s18 = smov %s1582_s21 }
 0x15e   :  { %14 = sbr.rel (!%p12_p6) target bundleno = 3 (0x3), region = 124 }
 0x163   :  { %933 = vsyncpa [#allocation5], 1 }
 0x164   :  { %935 = vsyncpa [#allocation5 + $0x1], 1 }

</bundles_post_ra>
